<compile_context>
chip_gen: v5e
topology: v5e:2x2
jax: 0.10.0
libtpu: 0.0.40
codegen_flags: <defaults>
</compile_context>

<pallas_src>
import functools
import math

import jax
import jax.numpy as jnp
from jax.experimental import pallas as pl
from jax.experimental.pallas import tpu as pltpu


# ----------------------------- generation-aware VMEM limit ---------------------
def _vmem_limit_bytes():
    cap = 64 * 1024 * 1024
    try:
        info = pltpu.get_tpu_info()
        cap = int(getattr(info, "vmem_capacity_bytes", cap) or cap)
    except Exception:
        pass
    # leave headroom on v7x (64 MiB physical); use up to ~100 MiB on v5e/v6e (128 MiB).
    return int(min(cap * 0.8, 100 * 1024 * 1024))


def _pick_batch_tile(B, target=8):
    """Largest batch chunk <= target that keeps the output block legal."""
    if B <= target:
        return B
    for d in range(target, 0, -1):
        if B % d == 0 and d % 8 == 0:
            return d
    return B  # fallback: single chunk (always correct)


def _pick_sub_chunk(Bt, Lp, target_rows=512):
    """Largest divisor of Bt whose row count (cb*Lp) stays <= ~512."""
    best = 1
    for d in range(1, Bt + 1):
        if Bt % d == 0 and d * Lp <= max(Lp, target_rows):
            best = d
    return best


# ----------------------------- shared helpers ----------------------------------
def _layernorm(v, g, b, eps=1e-5):
    v = v.astype(jnp.float32)
    mu = jnp.mean(v, axis=-1, keepdims=True)
    var = jnp.mean((v - mu) ** 2, axis=-1, keepdims=True)
    return (v - mu) * jax.lax.rsqrt(var + eps) * g + b


# ----------------------------- patch embedding ----------------------------------
def patch_embed_kernel(a_ref, w_ref, o_ref):
    # a: (TM, C*p*p) bf16 ; w: (C*p*p, D) bf16 ; o: (TM, D) bf16 (f32 accumulation)
    o_ref[...] = jnp.dot(a_ref[...], w_ref[...],
                         preferred_element_type=jnp.float32).astype(o_ref.dtype)


def patch_embed(image, conv_w, patch, *, vmem_limit, tile_m=512):
    # image: (B, 3, H, W) f32 ; conv_w: (D, 3, p, p) f32 (stride = p, no bias)
    B, C, H, W = image.shape
    D = conv_w.shape[0]
    gh, gw = H // patch, W // patch
    Np = gh * gw
    cpp = C * patch * patch

    patches = image.reshape(B, C, gh, patch, gw, patch)
    patches = patches.transpose(0, 2, 4, 1, 3, 5).reshape(B * Np, cpp)
    patches = patches.astype(jnp.bfloat16)
    w_flat = conv_w.reshape(D, cpp).T.astype(jnp.bfloat16)

    M = B * Np
    tm = tile_m if M >= tile_m else max(8, ((M + 7) // 8) * 8)
    m_pad = ((M + tm - 1) // tm) * tm
    if m_pad != M:
        patches = jnp.pad(patches, ((0, m_pad - M), (0, 0)))

    out = pl.pallas_call(
        patch_embed_kernel,
        out_shape=jax.ShapeDtypeStruct((m_pad, D), jnp.bfloat16),
        grid=(m_pad // tm,),
        in_specs=[pl.BlockSpec((tm, cpp), lambda i: (i, 0)),
                  pl.BlockSpec((cpp, D), lambda i: (0, 0))],
        out_specs=pl.BlockSpec((tm, D), lambda i: (i, 0)),
        compiler_params=pltpu.CompilerParams(
            dimension_semantics=("parallel",),
            vmem_limit_bytes=vmem_limit),
    )(patches, w_flat)
    return out[:M].reshape(B, Np, D)


# ----------------------------- fused VPT-Deep encoder ---------------------------
def vptd_encoder_kernel(
        xp_ref, cls_ref, pos_ref, lnpre_g_ref, lnpre_b_ref,
        ctx_ref,
        ln1g_ref, ln1b_ref, wqkv_ref, bqkv_ref, wo_ref, bo_ref,
        ln2g_ref, ln2b_ref, wfc_ref, bfc_ref, wpr_ref, bpr_ref,
        lnpost_g_ref, lnpost_b_ref, proj_ref, textt_ref, scale_ref,
        o_ref, xbuf, qkvbuf,
        *, n_heads, n_ctx, L0, n_real, cb):
    layer = pl.program_id(1)
    n_layers = pl.num_programs(1)
    Bt, Lp, D = xbuf.shape
    hd = D // n_heads
    qscale = 1.0 / math.sqrt(hd)

    # ---- layer 0: fused (cls concat + pos emb + ln_pre) into resident VMEM carry.
    # Padded token slots are zeroed once here; they stay finite & key-masked after.
    @pl.when(layer == 0)
    def _init():
        xbuf[...] = jnp.zeros((Bt, Lp, D), jnp.float32)
        cls_tok0 = _layernorm(cls_ref[...].astype(jnp.float32) + pos_ref[0:1, :],
                              lnpre_g_ref[...], lnpre_b_ref[...])          # (1, D)
        xbuf[:, 0:1, :] = jnp.broadcast_to(cls_tok0[None], (Bt, 1, D))
        # TODO(synk): xp could be streamed via memory_space=pl.ANY + a layer-0 DMA
        # instead of staying pipeline-resident for all layers of this batch chunk.
        xp = xp_ref[...].astype(jnp.float32) + pos_ref[1:L0, :][None]      # (Bt, Np, D)
        xbuf[:, 1:L0, :] = _layernorm(xp, lnpre_g_ref[...], lnpre_b_ref[...])

    # ---- VPT-Deep: overwrite the prompt slots with this layer's ctx tokens ----
    # (== drop last n_ctx tokens then append ctx[i] in the PyTorch reference)
    xbuf[:, L0:L0 + n_ctx, :] = jnp.broadcast_to(
        ctx_ref[...].astype(jnp.float32), (Bt, n_ctx, D))

    # key-axis mask for the sublane-padded token slots
    kidx = jax.lax.broadcasted_iota(jnp.int32, (1, Lp), 1)
    kbias = jnp.where(kidx < n_real, 0.0, -1e30).astype(jnp.float32)       # (1, Lp)

    # ---- transformer layer, processed in bounded batch sub-chunks ----
    for b0 in range(0, Bt, cb):
        R = cb * Lp
        xc = xbuf[b0:b0 + cb]                                              # (cb, Lp, D) f32

        # --- multi-head self-attention ---
        xn = _layernorm(xc, ln1g_ref[0], ln1b_ref[0]).reshape(R, D)
        qkv = jnp.dot(xn.astype(jnp.bfloat16), wqkv_ref[0],
                      preferred_element_type=jnp.float32) + bqkv_ref[0]    # (R, 3D) f32
        qkvbuf[...] = qkv.astype(jnp.bfloat16)                             # park in VMEM

        attn = jnp.zeros((R, D), jnp.float32)
        for h in range(n_heads):   # static unroll; q/k/v sliced from the VMEM ref
            qh = qkvbuf[:, h * hd:(h + 1) * hd].reshape(cb, Lp, hd)
            kh = qkvbuf[:, D + h * hd:D + (h + 1) * hd].reshape(cb, Lp, hd)
            vh = qkvbuf[:, 2 * D + h * hd:2 * D + (h + 1) * hd].reshape(cb, Lp, hd)
            s = jnp.einsum('bqd,bkd->bqk', qh, kh,
                           preferred_element_type=jnp.float32)             # (cb, Lp, Lp)
            s = s * qscale + kbias
            s = s - jnp.max(s, axis=-1, keepdims=True)
            p = jnp.exp(s)
            p = p / jnp.sum(p, axis=-1, keepdims=True)
            oh = jnp.einsum('bqk,bkd->bqd', p.astype(jnp.bfloat16), vh,
                            preferred_element_type=jnp.float32)            # (cb, Lp, hd)
            # fold this head straight into the output projection (no lane concat)
            attn = attn + jnp.dot(oh.reshape(R, hd).astype(jnp.bfloat16),
                                  wo_ref[0, h * hd:(h + 1) * hd, :],
                                  preferred_element_type=jnp.float32)
        xc = xc + (attn + bo_ref[0]).reshape(cb, Lp, D)

        # --- MLP with QuickGELU (CLIP: x * sigmoid(1.702 x)) ---
        xn2 = _layernorm(xc, ln2g_ref[0], ln2b_ref[0]).reshape(R, D)
        h1 = jnp.dot(xn2.astype(jnp.bfloat16), wfc_ref[0],
                     preferred_element_type=jnp.float32) + bfc_ref[0]      # (R, 4D)
        h1 = h1 * jax.nn.sigmoid(1.702 * h1)
        mlp = jnp.dot(h1.astype(jnp.bfloat16), wpr_ref[0],
                      preferred_element_type=jnp.float32) + bpr_ref[0]
        xc = xc + mlp.reshape(cb, Lp, D)

        xbuf[b0:b0 + cb] = xc

    # ---- last layer: fused head (ln_post -> proj -> L2 norm -> scaled logits) ----
    @pl.when(layer == n_layers - 1)
    def _head():
        cls_tok = xbuf[:, 0:1, :].reshape(Bt, D)                           # (Bt, D)
        feat = _layernorm(cls_tok, lnpost_g_ref[...], lnpost_b_ref[...])
        feat = jnp.dot(feat.astype(jnp.bfloat16), proj_ref[...],
                       preferred_element_type=jnp.float32)                 # (Bt, E)
        feat = feat * jax.lax.rsqrt(
            jnp.sum(feat * feat, axis=-1, keepdims=True) + 1e-12)
        logit_scale = scale_ref[0, 0]                # exp() applied in the wrapper
        o_ref[...] = logit_scale * jnp.dot(feat.astype(jnp.bfloat16), textt_ref[...],
                                           preferred_element_type=jnp.float32)
    # TODO(synk): the reference resblocks also return per-layer attention weights
    # (joint_attn); they are never consumed by CustomCLIP_VPTD.forward, so they
    # are not materialized here.


# ----------------------------- forward -------------------------------------------
def custom_clip_vptd_forward(params, image, *, n_ctx, n_heads, patch, batch_tile=8):
    image = image.astype(jnp.float32)            # image.type(self.dtype)
    B = image.shape[0]
    D = params['cls_emb'].shape[-1]
    L0 = params['pos_emb'].shape[0]
    layers = params['ctx'].shape[0]
    n_classes = params['text_features'].shape[0]

    n_real = L0 + n_ctx
    Lp = ((n_real + 7) // 8) * 8
    c_pad = ((n_classes + 127) // 128) * 128
    vmem_limit = _vmem_limit_bytes()

    Bt = _pick_batch_tile(B, batch_tile)
    nb = B // Bt
    cb = _pick_sub_chunk(Bt, Lp)

    # 1) patch embedding (conv1 with stride == kernel) as a tiled matmul, bf16 out
    xp = patch_embed(image, params['conv_w'], patch, vmem_limit=vmem_limit)  # (B, Np, D)
    Np = xp.shape[1]

    # text features are pre-normalized parameters; pad classes to a lane-dense width
    text_t = jnp.pad(params['text_features'],
                     ((0, c_pad - n_classes), (0, 0))).T.astype(jnp.bfloat16)  # (E, c_pad)
    logit_scale_exp = jnp.exp(params['logit_scale']).astype(jnp.float32)       # (1, 1)

    def resident(a):
        return pl.BlockSpec(a.shape, lambda bi, l, _n=a.ndim: (0,) * _n)

    def per_layer(a):
        return pl.BlockSpec((1,) + a.shape[1:],
                            lambda bi, l, _n=a.ndim: (l,) + (0,) * (_n - 1))

    kernel = functools.partial(vptd_encoder_kernel, n_heads=n_heads,
                               n_ctx=n_ctx, L0=L0, n_real=n_real, cb=cb)

    logits_pad = pl.pallas_call(
        kernel,
        out_shape=jax.ShapeDtypeStruct((B, c_pad), jnp.float32),
        grid=(nb, layers),
        in_specs=[
            pl.BlockSpec((Bt, Np, D), lambda bi, l: (bi, 0, 0)),   # xp: per-batch-chunk
            resident(params['cls_emb']), resident(params['pos_emb']),
            resident(params['ln_pre_g']), resident(params['ln_pre_b']),
            per_layer(params['ctx']),
            per_layer(params['ln1_g']), per_layer(params['ln1_b']),
            per_layer(params['w_qkv']), per_layer(params['b_qkv']),
            per_layer(params['w_out']), per_layer(params['b_out']),
            per_layer(params['ln2_g']), per_layer(params['ln2_b']),
            per_layer(params['w_fc']), per_layer(params['b_fc']),
            per_layer(params['w_pr']), per_layer(params['b_pr']),
            resident(params['ln_post_g']), resident(params['ln_post_b']),
            resident(params['proj']), resident(text_t),
            pl.BlockSpec(memory_space=pltpu.MemorySpace.SMEM),
        ],
        out_specs=pl.BlockSpec((Bt, c_pad), lambda bi, l: (bi, 0)),
        scratch_shapes=[pltpu.VMEM((Bt, Lp, D), jnp.float32),       # resident activation
                        pltpu.VMEM((cb * Lp, 3 * D), jnp.bfloat16)],  # parked QKV chunk
        compiler_params=pltpu.CompilerParams(
            dimension_semantics=("parallel", "arbitrary"),
            vmem_limit_bytes=vmem_limit),
    )(xp, params['cls_emb'], params['pos_emb'], params['ln_pre_g'], params['ln_pre_b'],
      params['ctx'], params['ln1_g'], params['ln1_b'], params['w_qkv'], params['b_qkv'],
      params['w_out'], params['b_out'], params['ln2_g'], params['ln2_b'],
      params['w_fc'], params['b_fc'], params['w_pr'], params['b_pr'],
      params['ln_post_g'], params['ln_post_b'], params['proj'], text_t,
      logit_scale_exp)

    return logits_pad[:, :n_classes]


# ----------------------------- deterministic init --------------------------------
def init_params(key, *, layers, n_ctx, D, E, n_classes, patch, L0):
    keys = iter(jax.random.split(key, 16))
    nxt = lambda: next(keys)
    std = 0.02
    nrm = lambda k, s: std * jax.random.normal(k, s, jnp.float32)
    p = {}
    p['conv_w'] = nrm(nxt(), (D, 3, patch, patch))
    p['cls_emb'] = nrm(nxt(), (1, D))
    p['pos_emb'] = nrm(nxt(), (L0, D))
    p['ln_pre_g'] = jnp.ones((1, D), jnp.float32)
    p['ln_pre_b'] = jnp.zeros((1, D), jnp.float32)
    p['ctx'] = nrm(nxt(), (layers, n_ctx, D))
    # per-layer transformer weights, stacked over layers; big matrices in bf16
    p['ln1_g'] = jnp.ones((layers, 1, D), jnp.float32)
    p['ln1_b'] = jnp.zeros((layers, 1, D), jnp.float32)
    p['w_qkv'] = nrm(nxt(), (layers, D, 3 * D)).astype(jnp.bfloat16)
    p['b_qkv'] = jnp.zeros((layers, 1, 3 * D), jnp.float32)
    p['w_out'] = nrm(nxt(), (layers, D, D)).astype(jnp.bfloat16)
    p['b_out'] = jnp.zeros((layers, 1, D), jnp.float32)
    p['ln2_g'] = jnp.ones((layers, 1, D), jnp.float32)
    p['ln2_b'] = jnp.zeros((layers, 1, D), jnp.float32)
    p['w_fc'] = nrm(nxt(), (layers, D, 4 * D)).astype(jnp.bfloat16)
    p['b_fc'] = jnp.zeros((layers, 1, 4 * D), jnp.float32)
    p['w_pr'] = nrm(nxt(), (layers, 4 * D, D)).astype(jnp.bfloat16)
    p['b_pr'] = jnp.zeros((layers, 1, D), jnp.float32)
    p['ln_post_g'] = jnp.ones((1, D), jnp.float32)
    p['ln_post_b'] = jnp.zeros((1, D), jnp.float32)
    p['proj'] = nrm(nxt(), (D, E)).astype(jnp.bfloat16)
    tf = jax.random.normal(nxt(), (n_classes, E), jnp.float32)
    p['text_features'] = tf / jnp.linalg.norm(tf, axis=-1, keepdims=True)
    p['logit_scale'] = jnp.full((1, 1), math.log(1.0 / 0.07), jnp.float32)
    return p


# ----------------------------- main ------------------------------------------------
if __name__ == "__main__":
    # Small synthetic config consistent with the module's forward:
    B, H, W = 2, 16, 16          # image batch / resolution (NCHW)
    patch = 8                    # conv1 kernel == stride
    D = 32                       # visual width (ctx_dim)
    E = 16                       # visual projection output dim
    layers = 2                   # transformer depth (== #VPT ctx groups)
    n_ctx = 2                    # VPT deep prompt length per layer
    n_heads = 4
    n_classes = 5
    Np = (H // patch) * (W // patch)
    L0 = Np + 1

    root = jax.random.PRNGKey(0)
    k_params, k_img = jax.random.split(root)
    params = init_params(k_params, layers=layers, n_ctx=n_ctx, D=D, E=E,
                         n_classes=n_classes, patch=patch, L0=L0)
    image = jax.random.normal(k_img, (B, 3, H, W), jnp.float32)

    fwd = jax.jit(functools.partial(custom_clip_vptd_forward,
                                    n_ctx=n_ctx, n_heads=n_heads, patch=patch))
    logits = jax.block_until_ready(fwd(params, image))
    assert logits.shape == (B, n_classes), logits.shape
    assert bool(jnp.all(jnp.isfinite(logits))), "non-finite logits"
    print("KERNEL_OK")
</pallas_src>

<mosaic_0001>
module attributes {stable_mosaic.version = 11 : i64} {
  func.func @patch_embed_kernel(%arg0: i32, %arg1: memref<8x192xbf16, #tpu.memory_space<vmem>>, %arg2: memref<192x32xbf16, #tpu.memory_space<vmem>>, %arg3: memref<8x32xbf16, #tpu.memory_space<vmem>>) attributes {dimension_semantics = [#tpu.dimension_semantics<parallel>], iteration_bounds = array<i64: 1>, scalar_prefetch = 0 : i64, scratch_operands = 0 : i64, tpu.core_type = #tpu.core_type<tc>, window_params = [{transform_indices = @transform_0, window_bounds = array<i64: 8, 192>}, {pipeline_mode = #tpu.pipeline_mode<synchronous>, transform_indices = @transform_1, window_bounds = array<i64: 192, 32>}, {transform_indices = @transform_2, window_bounds = array<i64: 8, 32>}]} {
    %c0 = arith.constant 0 : index
    %c0_0 = arith.constant 0 : index
    %0 = vector.load %arg1[%c0, %c0_0] : memref<8x192xbf16, #tpu.memory_space<vmem>>, vector<8x192xbf16>
    %c0_1 = arith.constant 0 : index
    %c0_2 = arith.constant 0 : index
    %1 = vector.load %arg2[%c0_1, %c0_2] : memref<192x32xbf16, #tpu.memory_space<vmem>>, vector<192x32xbf16>
    %cst = arith.constant dense<0.000000e+00> : vector<8x32xf32>
    %2 = tpu.matmul %0, %1, %cst {dimension_numbers = #tpu.dot_dimension_numbers<[1], [0], [0], [1], [0, 0, 1, 1], [], []>} : vector<8x192xbf16>, vector<192x32xbf16>, vector<8x32xf32> -> vector<8x32xf32>
    %3 = arith.truncf %2 : vector<8x32xf32> to vector<8x32xbf16>
    %c0_3 = arith.constant 0 : index
    %c0_4 = arith.constant 0 : index
    %4 = vector.load %arg3[%c0_3, %c0_4] : memref<8x32xbf16, #tpu.memory_space<vmem>>, vector<8x32xbf16>
    tpu.vector_store %arg3[%c0_3, %c0_4], %3 {strides = array<i32>} : memref<8x32xbf16, #tpu.memory_space<vmem>>, vector<8x32xbf16>,
    return
  }
  func.func @transform_0(%arg0: i32) -> (i32, i32) {
    %c0_i32 = arith.constant 0 : i32
    %c0_i32_0 = arith.constant 0 : i32
    return %arg0, %c0_i32 : i32, i32
  }
  func.func @transform_1(%arg0: i32) -> (i32, i32) {
    %c0_i32 = arith.constant 0 : i32
    %c0_i32_0 = arith.constant 0 : i32
    %c0_i32_1 = arith.constant 0 : i32
    return %c0_i32, %c0_i32_0 : i32, i32
  }
  func.func @transform_2(%arg0: i32) -> (i32, i32) {
    %c0_i32 = arith.constant 0 : i32
    %c0_i32_0 = arith.constant 0 : i32
    return %arg0, %c0_i32 : i32, i32
  }
}

module attributes {stable_mosaic.version = 11 : i64} {
  func.func @vptd_encoder_kernel(%arg0: i32, %arg1: i32, %arg2: memref<2x4x32xbf16, #tpu.memory_space<vmem>>, %arg3: memref<1x32xf32, #tpu.memory_space<vmem>>, %arg4: memref<5x32xf32, #tpu.memory_space<vmem>>, %arg5: memref<1x32xf32, #tpu.memory_space<vmem>>, %arg6: memref<1x32xf32, #tpu.memory_space<vmem>>, %arg7: memref<1x2x32xf32, #tpu.memory_space<vmem>>, %arg8: memref<1x1x32xf32, #tpu.memory_space<vmem>>, %arg9: memref<1x1x32xf32, #tpu.memory_space<vmem>>, %arg10: memref<1x32x96xbf16, #tpu.memory_space<vmem>>, %arg11: memref<1x1x96xf32, #tpu.memory_space<vmem>>, %arg12: memref<1x32x32xbf16, #tpu.memory_space<vmem>>, %arg13: memref<1x1x32xf32, #tpu.memory_space<vmem>>, %arg14: memref<1x1x32xf32, #tpu.memory_space<vmem>>, %arg15: memref<1x1x32xf32, #tpu.memory_space<vmem>>, %arg16: memref<1x32x128xbf16, #tpu.memory_space<vmem>>, %arg17: memref<1x1x128xf32, #tpu.memory_space<vmem>>, %arg18: memref<1x128x32xbf16, #tpu.memory_space<vmem>>, %arg19: memref<1x1x32xf32, #tpu.memory_space<vmem>>, %arg20: memref<1x32xf32, #tpu.memory_space<vmem>>, %arg21: memref<1x32xf32, #tpu.memory_space<vmem>>, %arg22: memref<32x16xbf16, #tpu.memory_space<vmem>>, %arg23: memref<16x128xbf16, #tpu.memory_space<vmem>>, %arg24: memref<1x1xf32, #tpu.memory_space<smem>>, %arg25: memref<2x128xf32, #tpu.memory_space<vmem>>, %arg26: memref<2x8x32xf32, #tpu.memory_space<vmem>>, %arg27: memref<16x96xbf16, #tpu.memory_space<vmem>>) attributes {dimension_semantics = [#tpu.dimension_semantics<parallel>, #tpu.dimension_semantics<arbitrary>], iteration_bounds = array<i64: 1, 2>, scalar_prefetch = 0 : i64, scratch_operands = 2 : i64, tpu.core_type = #tpu.core_type<tc>, window_params = [{transform_indices = @transform_0, window_bounds = array<i64: 2, 4, 32>}, {pipeline_mode = #tpu.pipeline_mode<synchronous>, transform_indices = @transform_1, window_bounds = array<i64: 1, 32>}, {pipeline_mode = #tpu.pipeline_mode<synchronous>, transform_indices = @transform_2, window_bounds = array<i64: 5, 32>}, {pipeline_mode = #tpu.pipeline_mode<synchronous>, transform_indices = @transform_3, window_bounds = array<i64: 1, 32>}, {pipeline_mode = #tpu.pipeline_mode<synchronous>, transform_indices = @transform_4, window_bounds = array<i64: 1, 32>}, {transform_indices = @transform_5, window_bounds = array<i64: 1, 2, 32>}, {transform_indices = @transform_6, window_bounds = array<i64: 1, 1, 32>}, {transform_indices = @transform_7, window_bounds = array<i64: 1, 1, 32>}, {transform_indices = @transform_8, window_bounds = array<i64: 1, 32, 96>}, {transform_indices = @transform_9, window_bounds = array<i64: 1, 1, 96>}, {transform_indices = @transform_10, window_bounds = array<i64: 1, 32, 32>}, {transform_indices = @transform_11, window_bounds = array<i64: 1, 1, 32>}, {transform_indices = @transform_12, window_bounds = array<i64: 1, 1, 32>}, {transform_indices = @transform_13, window_bounds = array<i64: 1, 1, 32>}, {transform_indices = @transform_14, window_bounds = array<i64: 1, 32, 128>}, {transform_indices = @transform_15, window_bounds = array<i64: 1, 1, 128>}, {transform_indices = @transform_16, window_bounds = array<i64: 1, 128, 32>}, {transform_indices = @transform_17, window_bounds = array<i64: 1, 1, 32>}, {pipeline_mode = #tpu.pipeline_mode<synchronous>, transform_indices = @transform_18, window_bounds = array<i64: 1, 32>}, {pipeline_mode = #tpu.pipeline_mode<synchronous>, transform_indices = @transform_19, window_bounds = array<i64: 1, 32>}, {pipeline_mode = #tpu.pipeline_mode<synchronous>, transform_indices = @transform_20, window_bounds = array<i64: 32, 16>}, {pipeline_mode = #tpu.pipeline_mode<synchronous>, transform_indices = @transform_21, window_bounds = array<i64: 16, 128>}, {transform_indices = @transform_22, window_bounds = array<i64: 1, 1>}, {transform_indices = @transform_23, window_bounds = array<i64: 2, 128>}]} {
    %c0_i32 = arith.constant 0 : i32
    %0 = arith.cmpi eq, %arg1, %c0_i32 : i32
    %1 = arith.extui %0 : i1 to i32
    %c0_i32_0 = arith.constant 0 : i32
    %2 = arith.cmpi ne, %1, %c0_i32_0 : i32
    scf.if %2 {
      %cst_113 = arith.constant 0.000000e+00 : f32
      %235 = vector.broadcast %cst_113 : f32 to vector<2x8x32xf32>
      %c0_114 = arith.constant 0 : index
      %c0_115 = arith.constant 0 : index
      %c0_116 = arith.constant 0 : index
      %236 = vector.load %arg26[%c0_114, %c0_115, %c0_116] : memref<2x8x32xf32, #tpu.memory_space<vmem>>, vector<2x8x32xf32>
      tpu.vector_store %arg26[%c0_114, %c0_115, %c0_116], %235 {strides = array<i32>} : memref<2x8x32xf32, #tpu.memory_space<vmem>>, vector<2x8x32xf32>,
      %c0_117 = arith.constant 0 : index
      %c0_118 = arith.constant 0 : index
      %237 = vector.load %arg3[%c0_117, %c0_118] : memref<1x32xf32, #tpu.memory_space<vmem>>, vector<1x32xf32>
      %c0_119 = arith.constant 0 : index
      %c0_120 = arith.constant 0 : index
      %238 = vector.load %arg4[%c0_119, %c0_120] : memref<5x32xf32, #tpu.memory_space<vmem>>, vector<1x32xf32>
      %239 = arith.addf %237, %238 : vector<1x32xf32>
      %c0_121 = arith.constant 0 : index
      %c0_122 = arith.constant 0 : index
      %240 = vector.load %arg5[%c0_121, %c0_122] : memref<1x32xf32, #tpu.memory_space<vmem>>, vector<1x32xf32>
      %c0_123 = arith.constant 0 : index
      %c0_124 = arith.constant 0 : index
      %241 = vector.load %arg6[%c0_123, %c0_124] : memref<1x32xf32, #tpu.memory_space<vmem>>, vector<1x32xf32>
      %cst_125 = arith.constant dense<0.000000e+00> : vector<1xf32>
      %242 = vector.multi_reduction <add>, %239, %cst_125 [1] : vector<1x32xf32> to vector<1xf32>
      %243 = vector.shape_cast %242 : vector<1xf32> to vector<1x1xf32>
      %cst_126 = arith.constant 3.200000e+01 : f32
      %244 = vector.broadcast %cst_126 : f32 to vector<1x1xf32>
      %245 = arith.divf %243, %244 : vector<1x1xf32>
      %246 = vector.broadcast %245 : vector<1x1xf32> to vector<1x32xf32>
      %247 = arith.subf %239, %246 : vector<1x32xf32>
      %248 = arith.mulf %247, %247 : vector<1x32xf32>
      %cst_127 = arith.constant dense<0.000000e+00> : vector<1xf32>
      %249 = vector.multi_reduction <add>, %248, %cst_127 [1] : vector<1x32xf32> to vector<1xf32>
      %250 = vector.shape_cast %249 : vector<1xf32> to vector<1x1xf32>
      %cst_128 = arith.constant 3.200000e+01 : f32
      %251 = vector.broadcast %cst_128 : f32 to vector<1x1xf32>
      %252 = arith.divf %250, %251 : vector<1x1xf32>
      %253 = vector.broadcast %245 : vector<1x1xf32> to vector<1x32xf32>
      %254 = arith.subf %239, %253 : vector<1x32xf32>
      %cst_129 = arith.constant 9.99999974E-6 : f32
      %255 = vector.broadcast %cst_129 : f32 to vector<1x1xf32>
      %256 = arith.addf %252, %255 : vector<1x1xf32>
      %257 = math.rsqrt %256 : vector<1x1xf32>
      %258 = vector.broadcast %257 : vector<1x1xf32> to vector<1x32xf32>
      %259 = arith.mulf %254, %258 : vector<1x32xf32>
      %260 = arith.mulf %259, %240 : vector<1x32xf32>
      %261 = arith.addf %260, %241 : vector<1x32xf32>
      %262 = vector.shape_cast %261 : vector<1x32xf32> to vector<1x1x32xf32>
      %263 = vector.shape_cast %262 : vector<1x1x32xf32> to vector<1x1x32xf32>
      %264 = vector.broadcast %263 : vector<1x1x32xf32> to vector<2x1x32xf32>
      %c0_130 = arith.constant 0 : index
      %c0_131 = arith.constant 0 : index
      %c0_132 = arith.constant 0 : index
      %265 = vector.load %arg26[%c0_130, %c0_131, %c0_132] : memref<2x8x32xf32, #tpu.memory_space<vmem>>, vector<2x1x32xf32>
      tpu.vector_store %arg26[%c0_130, %c0_131, %c0_132], %264 {strides = array<i32>} : memref<2x8x32xf32, #tpu.memory_space<vmem>>, vector<2x1x32xf32>,
      %c0_133 = arith.constant 0 : index
      %c0_134 = arith.constant 0 : index
      %c0_135 = arith.constant 0 : index
      %266 = vector.load %arg2[%c0_133, %c0_134, %c0_135] : memref<2x4x32xbf16, #tpu.memory_space<vmem>>, vector<2x4x32xbf16>
      %267 = arith.extf %266 : vector<2x4x32xbf16> to vector<2x4x32xf32>
      %c1 = arith.constant 1 : index
      %c0_136 = arith.constant 0 : index
      %268 = vector.load %arg4[%c1, %c0_136] : memref<5x32xf32, #tpu.memory_space<vmem>>, vector<4x32xf32>
      %269 = vector.shape_cast %268 : vector<4x32xf32> to vector<1x4x32xf32>
      %270 = vector.broadcast %269 : vector<1x4x32xf32> to vector<2x4x32xf32>
      %271 = arith.addf %267, %270 : vector<2x4x32xf32>
      %c0_137 = arith.constant 0 : index
      %c0_138 = arith.constant 0 : index
      %272 = vector.load %arg5[%c0_137, %c0_138] : memref<1x32xf32, #tpu.memory_space<vmem>>, vector<1x32xf32>
      %c0_139 = arith.constant 0 : index
      %c0_140 = arith.constant 0 : index
      %273 = vector.load %arg6[%c0_139, %c0_140] : memref<1x32xf32, #tpu.memory_space<vmem>>, vector<1x32xf32>
      %cst_141 = arith.constant dense<0.000000e+00> : vector<2x4xf32>
      %274 = vector.multi_reduction <add>, %271, %cst_141 [2] : vector<2x4x32xf32> to vector<2x4xf32>
      %275 = vector.shape_cast %274 : vector<2x4xf32> to vector<2x4x1xf32>
      %cst_142 = arith.constant 3.200000e+01 : f32
      %276 = vector.broadcast %cst_142 : f32 to vector<2x4x1xf32>
      %277 = arith.divf %275, %276 : vector<2x4x1xf32>
      %278 = vector.broadcast %277 : vector<2x4x1xf32> to vector<2x4x32xf32>
      %279 = arith.subf %271, %278 : vector<2x4x32xf32>
      %280 = arith.mulf %279, %279 : vector<2x4x32xf32>
      %cst_143 = arith.constant dense<0.000000e+00> : vector<2x4xf32>
      %281 = vector.multi_reduction <add>, %280, %cst_143 [2] : vector<2x4x32xf32> to vector<2x4xf32>
      %282 = vector.shape_cast %281 : vector<2x4xf32> to vector<2x4x1xf32>
      %cst_144 = arith.constant 3.200000e+01 : f32
      %283 = vector.broadcast %cst_144 : f32 to vector<2x4x1xf32>
      %284 = arith.divf %282, %283 : vector<2x4x1xf32>
      %285 = vector.broadcast %277 : vector<2x4x1xf32> to vector<2x4x32xf32>
      %286 = arith.subf %271, %285 : vector<2x4x32xf32>
      %cst_145 = arith.constant 9.99999974E-6 : f32
      %287 = vector.broadcast %cst_145 : f32 to vector<2x4x1xf32>
      %288 = arith.addf %284, %287 : vector<2x4x1xf32>
      %289 = math.rsqrt %288 : vector<2x4x1xf32>
      %290 = vector.broadcast %289 : vector<2x4x1xf32> to vector<2x4x32xf32>
      %291 = arith.mulf %286, %290 : vector<2x4x32xf32>
      %292 = vector.shape_cast %272 : vector<1x32xf32> to vector<1x1x32xf32>
      %293 = vector.broadcast %292 : vector<1x1x32xf32> to vector<2x4x32xf32>
      %294 = arith.mulf %291, %293 : vector<2x4x32xf32>
      %295 = vector.shape_cast %273 : vector<1x32xf32> to vector<1x1x32xf32>
      %296 = vector.broadcast %295 : vector<1x1x32xf32> to vector<2x4x32xf32>
      %297 = arith.addf %294, %296 : vector<2x4x32xf32>
      %c0_146 = arith.constant 0 : index
      %c1_147 = arith.constant 1 : index
      %c0_148 = arith.constant 0 : index
      %298 = vector.load %arg26[%c0_146, %c1_147, %c0_148] : memref<2x8x32xf32, #tpu.memory_space<vmem>>, vector<2x4x32xf32>
      tpu.vector_store %arg26[%c0_146, %c1_147, %c0_148], %297 {strides = array<i32>} : memref<2x8x32xf32, #tpu.memory_space<vmem>>, vector<2x4x32xf32>,
    } else {
    }
    %c0 = arith.constant 0 : index
    %c0_1 = arith.constant 0 : index
    %c0_2 = arith.constant 0 : index
    %3 = vector.load %arg7[%c0, %c0_1, %c0_2] : memref<1x2x32xf32, #tpu.memory_space<vmem>>, vector<1x2x32xf32>
    %4 = vector.shape_cast %3 : vector<1x2x32xf32> to vector<1x2x32xf32>
    %5 = vector.broadcast %4 : vector<1x2x32xf32> to vector<2x2x32xf32>
    %c0_3 = arith.constant 0 : index
    %c5 = arith.constant 5 : index
    %c0_4 = arith.constant 0 : index
    %6 = vector.load %arg26[%c0_3, %c5, %c0_4] : memref<2x8x32xf32, #tpu.memory_space<vmem>>, vector<2x2x32xf32>
    tpu.vector_store %arg26[%c0_3, %c5, %c0_4], %5 {strides = array<i32>} : memref<2x8x32xf32, #tpu.memory_space<vmem>>, vector<2x2x32xf32>,
    %7 = tpu.iota {dimensions = array<i32: 1>} : vector<1x8xi32>
    %c7_i32 = arith.constant 7 : i32
    %8 = vector.broadcast %c7_i32 : i32 to vector<1x8xi32>
    %9 = arith.cmpi slt, %7, %8 : vector<1x8xi32>
    %cst = arith.constant 0.000000e+00 : f32
    %cst_5 = arith.constant -1.000000e+30 : f32
    %10 = vector.broadcast %cst : f32 to vector<1x8xf32>
    %11 = vector.broadcast %cst_5 : f32 to vector<1x8xf32>
    %12 = arith.select %9, %10, %11 : vector<1x8xi1>, vector<1x8xf32>
    %c0_6 = arith.constant 0 : index
    %c0_7 = arith.constant 0 : index
    %c0_8 = arith.constant 0 : index
    %13 = vector.load %arg26[%c0_6, %c0_7, %c0_8] : memref<2x8x32xf32, #tpu.memory_space<vmem>>, vector<2x8x32xf32>
    %c0_9 = arith.constant 0 : index
    %c0_10 = arith.constant 0 : index
    %c0_11 = arith.constant 0 : index
    %14 = vector.load %arg8[%c0_9, %c0_10, %c0_11] : memref<1x1x32xf32, #tpu.memory_space<vmem>>, vector<1x1x32xf32>
    %15 = vector.shape_cast %14 : vector<1x1x32xf32> to vector<1x32xf32>
    %c0_12 = arith.constant 0 : index
    %c0_13 = arith.constant 0 : index
    %c0_14 = arith.constant 0 : index
    %16 = vector.load %arg9[%c0_12, %c0_13, %c0_14] : memref<1x1x32xf32, #tpu.memory_space<vmem>>, vector<1x1x32xf32>
    %17 = vector.shape_cast %16 : vector<1x1x32xf32> to vector<1x32xf32>
    %cst_15 = arith.constant dense<0.000000e+00> : vector<2x8xf32>
    %18 = vector.multi_reduction <add>, %13, %cst_15 [2] : vector<2x8x32xf32> to vector<2x8xf32>
    %19 = vector.shape_cast %18 : vector<2x8xf32> to vector<2x8x1xf32>
    %cst_16 = arith.constant 3.200000e+01 : f32
    %20 = vector.broadcast %cst_16 : f32 to vector<2x8x1xf32>
    %21 = arith.divf %19, %20 : vector<2x8x1xf32>
    %22 = vector.broadcast %21 : vector<2x8x1xf32> to vector<2x8x32xf32>
    %23 = arith.subf %13, %22 : vector<2x8x32xf32>
    %24 = arith.mulf %23, %23 : vector<2x8x32xf32>
    %cst_17 = arith.constant dense<0.000000e+00> : vector<2x8xf32>
    %25 = vector.multi_reduction <add>, %24, %cst_17 [2] : vector<2x8x32xf32> to vector<2x8xf32>
    %26 = vector.shape_cast %25 : vector<2x8xf32> to vector<2x8x1xf32>
    %cst_18 = arith.constant 3.200000e+01 : f32
    %27 = vector.broadcast %cst_18 : f32 to vector<2x8x1xf32>
    %28 = arith.divf %26, %27 : vector<2x8x1xf32>
    %29 = vector.broadcast %21 : vector<2x8x1xf32> to vector<2x8x32xf32>
    %30 = arith.subf %13, %29 : vector<2x8x32xf32>
    %cst_19 = arith.constant 9.99999974E-6 : f32
    %31 = vector.broadcast %cst_19 : f32 to vector<2x8x1xf32>
    %32 = arith.addf %28, %31 : vector<2x8x1xf32>
    %33 = math.rsqrt %32 : vector<2x8x1xf32>
    %34 = vector.broadcast %33 : vector<2x8x1xf32> to vector<2x8x32xf32>
    %35 = arith.mulf %30, %34 : vector<2x8x32xf32>
    %36 = vector.shape_cast %15 : vector<1x32xf32> to vector<1x1x32xf32>
    %37 = vector.broadcast %36 : vector<1x1x32xf32> to vector<2x8x32xf32>
    %38 = arith.mulf %35, %37 : vector<2x8x32xf32>
    %39 = vector.shape_cast %17 : vector<1x32xf32> to vector<1x1x32xf32>
    %40 = vector.broadcast %39 : vector<1x1x32xf32> to vector<2x8x32xf32>
    %41 = arith.addf %38, %40 : vector<2x8x32xf32>
    %42 = vector.shape_cast %41 : vector<2x8x32xf32> to vector<16x32xf32>
    %43 = arith.truncf %42 : vector<16x32xf32> to vector<16x32xbf16>
    %c0_20 = arith.constant 0 : index
    %c0_21 = arith.constant 0 : index
    %c0_22 = arith.constant 0 : index
    %44 = vector.load %arg10[%c0_20, %c0_21, %c0_22] : memref<1x32x96xbf16, #tpu.memory_space<vmem>>, vector<1x32x96xbf16>
    %45 = vector.shape_cast %44 : vector<1x32x96xbf16> to vector<32x96xbf16>
    %cst_23 = arith.constant dense<0.000000e+00> : vector<16x96xf32>
    %46 = tpu.matmul %43, %45, %cst_23 {dimension_numbers = #tpu.dot_dimension_numbers<[1], [0], [0], [1], [0, 0, 1, 1], [], []>} : vector<16x32xbf16>, vector<32x96xbf16>, vector<16x96xf32> -> vector<16x96xf32>
    %c0_24 = arith.constant 0 : index
    %c0_25 = arith.constant 0 : index
    %c0_26 = arith.constant 0 : index
    %47 = vector.load %arg11[%c0_24, %c0_25, %c0_26] : memref<1x1x96xf32, #tpu.memory_space<vmem>>, vector<1x1x96xf32>
    %48 = vector.shape_cast %47 : vector<1x1x96xf32> to vector<1x96xf32>
    %49 = vector.broadcast %48 : vector<1x96xf32> to vector<16x96xf32>
    %50 = arith.addf %46, %49 : vector<16x96xf32>
    %51 = arith.truncf %50 : vector<16x96xf32> to vector<16x96xbf16>
    %c0_27 = arith.constant 0 : index
    %c0_28 = arith.constant 0 : index
    %52 = vector.load %arg27[%c0_27, %c0_28] : memref<16x96xbf16, #tpu.memory_space<vmem>>, vector<16x96xbf16>
    tpu.vector_store %arg27[%c0_27, %c0_28], %51 {strides = array<i32>} : memref<16x96xbf16, #tpu.memory_space<vmem>>, vector<16x96xbf16>,
    %cst_29 = arith.constant 0.000000e+00 : f32
    %53 = vector.broadcast %cst_29 : f32 to vector<16x32xf32>
    %c0_30 = arith.constant 0 : index
    %c0_31 = arith.constant 0 : index
    %54 = vector.load %arg27[%c0_30, %c0_31] : memref<16x96xbf16, #tpu.memory_space<vmem>>, vector<16x8xbf16>
    %55 = vector.shape_cast %54 : vector<16x8xbf16> to vector<2x8x8xbf16>
    %c0_32 = arith.constant 0 : index
    %c32 = arith.constant 32 : index
    %56 = vector.load %arg27[%c0_32, %c32] : memref<16x96xbf16, #tpu.memory_space<vmem>>, vector<16x8xbf16>
    %57 = vector.shape_cast %56 : vector<16x8xbf16> to vector<2x8x8xbf16>
    %c0_33 = arith.constant 0 : index
    %c64 = arith.constant 64 : index
    %58 = vector.load %arg27[%c0_33, %c64] : memref<16x96xbf16, #tpu.memory_space<vmem>>, vector<16x8xbf16>
    %59 = vector.shape_cast %58 : vector<16x8xbf16> to vector<2x8x8xbf16>
    "tpu.trace_start"() <{level = 10 : i32, message = "bqd,bkd->bqk"}> : () -> ()
    %cst_34 = arith.constant dense<0.000000e+00> : vector<2x8x8xf32>
    %60 = tpu.matmul %55, %57, %cst_34 {dimension_numbers = #tpu.dot_dimension_numbers<[2], [2], [1], [1], [0, 0, 0, 1, 1, 1], [0], [0]>} : vector<2x8x8xbf16>, vector<2x8x8xbf16>, vector<2x8x8xf32> -> vector<2x8x8xf32>
    "tpu.trace_stop"() : () -> ()
    %cst_35 = arith.constant 0.353553385 : f32
    %61 = vector.broadcast %cst_35 : f32 to vector<2x8x8xf32>
    %62 = arith.mulf %60, %61 : vector<2x8x8xf32>
    %63 = vector.shape_cast %12 : vector<1x8xf32> to vector<1x1x8xf32>
    %64 = vector.broadcast %63 : vector<1x1x8xf32> to vector<2x8x8xf32>
    %65 = arith.addf %62, %64 : vector<2x8x8xf32>
    %cst_36 = arith.constant dense<0xFF800000> : vector<2x8xf32>
    %66 = vector.multi_reduction <maximumf>, %65, %cst_36 [2] : vector<2x8x8xf32> to vector<2x8xf32>
    %67 = vector.shape_cast %66 : vector<2x8xf32> to vector<2x8x1xf32>
    %68 = vector.broadcast %67 : vector<2x8x1xf32> to vector<2x8x8xf32>
    %69 = arith.subf %65, %68 : vector<2x8x8xf32>
    %70 = math.exp %69 : vector<2x8x8xf32>
    %cst_37 = arith.constant dense<0.000000e+00> : vector<2x8xf32>
    %71 = vector.multi_reduction <add>, %70, %cst_37 [2] : vector<2x8x8xf32> to vector<2x8xf32>
    %72 = vector.shape_cast %71 : vector<2x8xf32> to vector<2x8x1xf32>
    %73 = vector.broadcast %72 : vector<2x8x1xf32> to vector<2x8x8xf32>
    %74 = arith.divf %70, %73 : vector<2x8x8xf32>
    %75 = arith.truncf %74 : vector<2x8x8xf32> to vector<2x8x8xbf16>
    "tpu.trace_start"() <{level = 10 : i32, message = "bqk,bkd->bqd"}> : () -> ()
    %cst_38 = arith.constant dense<0.000000e+00> : vector<2x8x8xf32>
    %76 = tpu.matmul %75, %59, %cst_38 {dimension_numbers = #tpu.dot_dimension_numbers<[2], [1], [1], [2], [0, 0, 0, 1, 1, 2], [0], [0]>} : vector<2x8x8xbf16>, vector<2x8x8xbf16>, vector<2x8x8xf32> -> vector<2x8x8xf32>
    "tpu.trace_stop"() : () -> ()
    %77 = vector.shape_cast %76 : vector<2x8x8xf32> to vector<16x8xf32>
    %78 = arith.truncf %77 : vector<16x8xf32> to vector<16x8xbf16>
    %c0_39 = arith.constant 0 : index
    %c0_40 = arith.constant 0 : index
    %c0_41 = arith.constant 0 : index
    %79 = vector.load %arg12[%c0_39, %c0_40, %c0_41] : memref<1x32x32xbf16, #tpu.memory_space<vmem>>, vector<1x8x32xbf16>
    %80 = vector.shape_cast %79 : vector<1x8x32xbf16> to vector<8x32xbf16>
    %cst_42 = arith.constant dense<0.000000e+00> : vector<16x32xf32>
    %81 = tpu.matmul %78, %80, %cst_42 {dimension_numbers = #tpu.dot_dimension_numbers<[1], [0], [0], [1], [0, 0, 1, 1], [], []>} : vector<16x8xbf16>, vector<8x32xbf16>, vector<16x32xf32> -> vector<16x32xf32>
    %82 = arith.addf %53, %81 : vector<16x32xf32>
    %c0_43 = arith.constant 0 : index
    %c8 = arith.constant 8 : index
    %83 = vector.load %arg27[%c0_43, %c8] : memref<16x96xbf16, #tpu.memory_space<vmem>>, vector<16x8xbf16>
    %84 = vector.shape_cast %83 : vector<16x8xbf16> to vector<2x8x8xbf16>
    %c0_44 = arith.constant 0 : index
    %c40 = arith.constant 40 : index
    %85 = vector.load %arg27[%c0_44, %c40] : memref<16x96xbf16, #tpu.memory_space<vmem>>, vector<16x8xbf16>
    %86 = vector.shape_cast %85 : vector<16x8xbf16> to vector<2x8x8xbf16>
    %c0_45 = arith.constant 0 : index
    %c72 = arith.constant 72 : index
    %87 = vector.load %arg27[%c0_45, %c72] : memref<16x96xbf16, #tpu.memory_space<vmem>>, vector<16x8xbf16>
    %88 = vector.shape_cast %87 : vector<16x8xbf16> to vector<2x8x8xbf16>
    "tpu.trace_start"() <{level = 10 : i32, message = "bqd,bkd->bqk"}> : () -> ()
    %cst_46 = arith.constant dense<0.000000e+00> : vector<2x8x8xf32>
    %89 = tpu.matmul %84, %86, %cst_46 {dimension_numbers = #tpu.dot_dimension_numbers<[2], [2], [1], [1], [0, 0, 0, 1, 1, 1], [0], [0]>} : vector<2x8x8xbf16>, vector<2x8x8xbf16>, vector<2x8x8xf32> -> vector<2x8x8xf32>
    "tpu.trace_stop"() : () -> ()
    %cst_47 = arith.constant 0.353553385 : f32
    %90 = vector.broadcast %cst_47 : f32 to vector<2x8x8xf32>
    %91 = arith.mulf %89, %90 : vector<2x8x8xf32>
    %92 = vector.shape_cast %12 : vector<1x8xf32> to vector<1x1x8xf32>
    %93 = vector.broadcast %92 : vector<1x1x8xf32> to vector<2x8x8xf32>
    %94 = arith.addf %91, %93 : vector<2x8x8xf32>
    %cst_48 = arith.constant dense<0xFF800000> : vector<2x8xf32>
    %95 = vector.multi_reduction <maximumf>, %94, %cst_48 [2] : vector<2x8x8xf32> to vector<2x8xf32>
    %96 = vector.shape_cast %95 : vector<2x8xf32> to vector<2x8x1xf32>
    %97 = vector.broadcast %96 : vector<2x8x1xf32> to vector<2x8x8xf32>
    %98 = arith.subf %94, %97 : vector<2x8x8xf32>
    %99 = math.exp %98 : vector<2x8x8xf32>
    %cst_49 = arith.constant dense<0.000000e+00> : vector<2x8xf32>
    %100 = vector.multi_reduction <add>, %99, %cst_49 [2] : vector<2x8x8xf32> to vector<2x8xf32>
    %101 = vector.shape_cast %100 : vector<2x8xf32> to vector<2x8x1xf32>
    %102 = vector.broadcast %101 : vector<2x8x1xf32> to vector<2x8x8xf32>
    %103 = arith.divf %99, %102 : vector<2x8x8xf32>
    %104 = arith.truncf %103 : vector<2x8x8xf32> to vector<2x8x8xbf16>
    "tpu.trace_start"() <{level = 10 : i32, message = "bqk,bkd->bqd"}> : () -> ()
    %cst_50 = arith.constant dense<0.000000e+00> : vector<2x8x8xf32>
    %105 = tpu.matmul %104, %88, %cst_50 {dimension_numbers = #tpu.dot_dimension_numbers<[2], [1], [1], [2], [0, 0, 0, 1, 1, 2], [0], [0]>} : vector<2x8x8xbf16>, vector<2x8x8xbf16>, vector<2x8x8xf32> -> vector<2x8x8xf32>
    "tpu.trace_stop"() : () -> ()
    %106 = vector.shape_cast %105 : vector<2x8x8xf32> to vector<16x8xf32>
    %107 = arith.truncf %106 : vector<16x8xf32> to vector<16x8xbf16>
    %c0_51 = arith.constant 0 : index
    %c8_52 = arith.constant 8 : index
    %c0_53 = arith.constant 0 : index
    %108 = vector.load %arg12[%c0_51, %c8_52, %c0_53] : memref<1x32x32xbf16, #tpu.memory_space<vmem>>, vector<1x8x32xbf16>
    %109 = vector.shape_cast %108 : vector<1x8x32xbf16> to vector<8x32xbf16>
    %cst_54 = arith.constant dense<0.000000e+00> : vector<16x32xf32>
    %110 = tpu.matmul %107, %109, %cst_54 {dimension_numbers = #tpu.dot_dimension_numbers<[1], [0], [0], [1], [0, 0, 1, 1], [], []>} : vector<16x8xbf16>, vector<8x32xbf16>, vector<16x32xf32> -> vector<16x32xf32>
    %111 = arith.addf %82, %110 : vector<16x32xf32>
    %c0_55 = arith.constant 0 : index
    %c16 = arith.constant 16 : index
    %112 = vector.load %arg27[%c0_55, %c16] : memref<16x96xbf16, #tpu.memory_space<vmem>>, vector<16x8xbf16>
    %113 = vector.shape_cast %112 : vector<16x8xbf16> to vector<2x8x8xbf16>
    %c0_56 = arith.constant 0 : index
    %c48 = arith.constant 48 : index
    %114 = vector.load %arg27[%c0_56, %c48] : memref<16x96xbf16, #tpu.memory_space<vmem>>, vector<16x8xbf16>
    %115 = vector.shape_cast %114 : vector<16x8xbf16> to vector<2x8x8xbf16>
    %c0_57 = arith.constant 0 : index
    %c80 = arith.constant 80 : index
    %116 = vector.load %arg27[%c0_57, %c80] : memref<16x96xbf16, #tpu.memory_space<vmem>>, vector<16x8xbf16>
    %117 = vector.shape_cast %116 : vector<16x8xbf16> to vector<2x8x8xbf16>
    "tpu.trace_start"() <{level = 10 : i32, message = "bqd,bkd->bqk"}> : () -> ()
    %cst_58 = arith.constant dense<0.000000e+00> : vector<2x8x8xf32>
    %118 = tpu.matmul %113, %115, %cst_58 {dimension_numbers = #tpu.dot_dimension_numbers<[2], [2], [1], [1], [0, 0, 0, 1, 1, 1], [0], [0]>} : vector<2x8x8xbf16>, vector<2x8x8xbf16>, vector<2x8x8xf32> -> vector<2x8x8xf32>
    "tpu.trace_stop"() : () -> ()
    %cst_59 = arith.constant 0.353553385 : f32
    %119 = vector.broadcast %cst_59 : f32 to vector<2x8x8xf32>
    %120 = arith.mulf %118, %119 : vector<2x8x8xf32>
    %121 = vector.shape_cast %12 : vector<1x8xf32> to vector<1x1x8xf32>
    %122 = vector.broadcast %121 : vector<1x1x8xf32> to vector<2x8x8xf32>
    %123 = arith.addf %120, %122 : vector<2x8x8xf32>
    %cst_60 = arith.constant dense<0xFF800000> : vector<2x8xf32>
    %124 = vector.multi_reduction <maximumf>, %123, %cst_60 [2] : vector<2x8x8xf32> to vector<2x8xf32>
    %125 = vector.shape_cast %124 : vector<2x8xf32> to vector<2x8x1xf32>
    %126 = vector.broadcast %125 : vector<2x8x1xf32> to vector<2x8x8xf32>
    %127 = arith.subf %123, %126 : vector<2x8x8xf32>
    %128 = math.exp %127 : vector<2x8x8xf32>
    %cst_61 = arith.constant dense<0.000000e+00> : vector<2x8xf32>
    %129 = vector.multi_reduction <add>, %128, %cst_61 [2] : vector<2x8x8xf32> to vector<2x8xf32>
    %130 = vector.shape_cast %129 : vector<2x8xf32> to vector<2x8x1xf32>
    %131 = vector.broadcast %130 : vector<2x8x1xf32> to vector<2x8x8xf32>
    %132 = arith.divf %128, %131 : vector<2x8x8xf32>
    %133 = arith.truncf %132 : vector<2x8x8xf32> to vector<2x8x8xbf16>
    "tpu.trace_start"() <{level = 10 : i32, message = "bqk,bkd->bqd"}> : () -> ()
    %cst_62 = arith.constant dense<0.000000e+00> : vector<2x8x8xf32>
    %134 = tpu.matmul %133, %117, %cst_62 {dimension_numbers = #tpu.dot_dimension_numbers<[2], [1], [1], [2], [0, 0, 0, 1, 1, 2], [0], [0]>} : vector<2x8x8xbf16>, vector<2x8x8xbf16>, vector<2x8x8xf32> -> vector<2x8x8xf32>
    "tpu.trace_stop"() : () -> ()
    %135 = vector.shape_cast %134 : vector<2x8x8xf32> to vector<16x8xf32>
    %136 = arith.truncf %135 : vector<16x8xf32> to vector<16x8xbf16>
    %c0_63 = arith.constant 0 : index
    %c16_64 = arith.constant 16 : index
    %c0_65 = arith.constant 0 : index
    %137 = vector.load %arg12[%c0_63, %c16_64, %c0_65] : memref<1x32x32xbf16, #tpu.memory_space<vmem>>, vector<1x8x32xbf16>
    %138 = vector.shape_cast %137 : vector<1x8x32xbf16> to vector<8x32xbf16>
    %cst_66 = arith.constant dense<0.000000e+00> : vector<16x32xf32>
    %139 = tpu.matmul %136, %138, %cst_66 {dimension_numbers = #tpu.dot_dimension_numbers<[1], [0], [0], [1], [0, 0, 1, 1], [], []>} : vector<16x8xbf16>, vector<8x32xbf16>, vector<16x32xf32> -> vector<16x32xf32>
    %140 = arith.addf %111, %139 : vector<16x32xf32>
    %c0_67 = arith.constant 0 : index
    %c24 = arith.constant 24 : index
    %141 = vector.load %arg27[%c0_67, %c24] : memref<16x96xbf16, #tpu.memory_space<vmem>>, vector<16x8xbf16>
    %142 = vector.shape_cast %141 : vector<16x8xbf16> to vector<2x8x8xbf16>
    %c0_68 = arith.constant 0 : index
    %c56 = arith.constant 56 : index
    %143 = vector.load %arg27[%c0_68, %c56] : memref<16x96xbf16, #tpu.memory_space<vmem>>, vector<16x8xbf16>
    %144 = vector.shape_cast %143 : vector<16x8xbf16> to vector<2x8x8xbf16>
    %c0_69 = arith.constant 0 : index
    %c88 = arith.constant 88 : index
    %145 = vector.load %arg27[%c0_69, %c88] : memref<16x96xbf16, #tpu.memory_space<vmem>>, vector<16x8xbf16>
    %146 = vector.shape_cast %145 : vector<16x8xbf16> to vector<2x8x8xbf16>
    "tpu.trace_start"() <{level = 10 : i32, message = "bqd,bkd->bqk"}> : () -> ()
    %cst_70 = arith.constant dense<0.000000e+00> : vector<2x8x8xf32>
    %147 = tpu.matmul %142, %144, %cst_70 {dimension_numbers = #tpu.dot_dimension_numbers<[2], [2], [1], [1], [0, 0, 0, 1, 1, 1], [0], [0]>} : vector<2x8x8xbf16>, vector<2x8x8xbf16>, vector<2x8x8xf32> -> vector<2x8x8xf32>
    "tpu.trace_stop"() : () -> ()
    %cst_71 = arith.constant 0.353553385 : f32
    %148 = vector.broadcast %cst_71 : f32 to vector<2x8x8xf32>
    %149 = arith.mulf %147, %148 : vector<2x8x8xf32>
    %150 = vector.shape_cast %12 : vector<1x8xf32> to vector<1x1x8xf32>
    %151 = vector.broadcast %150 : vector<1x1x8xf32> to vector<2x8x8xf32>
    %152 = arith.addf %149, %151 : vector<2x8x8xf32>
    %cst_72 = arith.constant dense<0xFF800000> : vector<2x8xf32>
    %153 = vector.multi_reduction <maximumf>, %152, %cst_72 [2] : vector<2x8x8xf32> to vector<2x8xf32>
    %154 = vector.shape_cast %153 : vector<2x8xf32> to vector<2x8x1xf32>
    %155 = vector.broadcast %154 : vector<2x8x1xf32> to vector<2x8x8xf32>
    %156 = arith.subf %152, %155 : vector<2x8x8xf32>
    %157 = math.exp %156 : vector<2x8x8xf32>
    %cst_73 = arith.constant dense<0.000000e+00> : vector<2x8xf32>
    %158 = vector.multi_reduction <add>, %157, %cst_73 [2] : vector<2x8x8xf32> to vector<2x8xf32>
    %159 = vector.shape_cast %158 : vector<2x8xf32> to vector<2x8x1xf32>
    %160 = vector.broadcast %159 : vector<2x8x1xf32> to vector<2x8x8xf32>
    %161 = arith.divf %157, %160 : vector<2x8x8xf32>
    %162 = arith.truncf %161 : vector<2x8x8xf32> to vector<2x8x8xbf16>
    "tpu.trace_start"() <{level = 10 : i32, message = "bqk,bkd->bqd"}> : () -> ()
    %cst_74 = arith.constant dense<0.000000e+00> : vector<2x8x8xf32>
    %163 = tpu.matmul %162, %146, %cst_74 {dimension_numbers = #tpu.dot_dimension_numbers<[2], [1], [1], [2], [0, 0, 0, 1, 1, 2], [0], [0]>} : vector<2x8x8xbf16>, vector<2x8x8xbf16>, vector<2x8x8xf32> -> vector<2x8x8xf32>
    "tpu.trace_stop"() : () -> ()
    %164 = vector.shape_cast %163 : vector<2x8x8xf32> to vector<16x8xf32>
    %165 = arith.truncf %164 : vector<16x8xf32> to vector<16x8xbf16>
    %c0_75 = arith.constant 0 : index
    %c24_76 = arith.constant 24 : index
    %c0_77 = arith.constant 0 : index
    %166 = vector.load %arg12[%c0_75, %c24_76, %c0_77] : memref<1x32x32xbf16, #tpu.memory_space<vmem>>, vector<1x8x32xbf16>
    %167 = vector.shape_cast %166 : vector<1x8x32xbf16> to vector<8x32xbf16>
    %cst_78 = arith.constant dense<0.000000e+00> : vector<16x32xf32>
    %168 = tpu.matmul %165, %167, %cst_78 {dimension_numbers = #tpu.dot_dimension_numbers<[1], [0], [0], [1], [0, 0, 1, 1], [], []>} : vector<16x8xbf16>, vector<8x32xbf16>, vector<16x32xf32> -> vector<16x32xf32>
    %169 = arith.addf %140, %168 : vector<16x32xf32>
    %c0_79 = arith.constant 0 : index
    %c0_80 = arith.constant 0 : index
    %c0_81 = arith.constant 0 : index
    %170 = vector.load %arg13[%c0_79, %c0_80, %c0_81] : memref<1x1x32xf32, #tpu.memory_space<vmem>>, vector<1x1x32xf32>
    %171 = vector.shape_cast %170 : vector<1x1x32xf32> to vector<1x32xf32>
    %172 = vector.broadcast %171 : vector<1x32xf32> to vector<16x32xf32>
    %173 = arith.addf %169, %172 : vector<16x32xf32>
    %174 = vector.shape_cast %173 : vector<16x32xf32> to vector<2x8x32xf32>
    %175 = arith.addf %13, %174 : vector<2x8x32xf32>
    %c0_82 = arith.constant 0 : index
    %c0_83 = arith.constant 0 : index
    %c0_84 = arith.constant 0 : index
    %176 = vector.load %arg14[%c0_82, %c0_83, %c0_84] : memref<1x1x32xf32, #tpu.memory_space<vmem>>, vector<1x1x32xf32>
    %177 = vector.shape_cast %176 : vector<1x1x32xf32> to vector<1x32xf32>
    %c0_85 = arith.constant 0 : index
    %c0_86 = arith.constant 0 : index
    %c0_87 = arith.constant 0 : index
    %178 = vector.load %arg15[%c0_85, %c0_86, %c0_87] : memref<1x1x32xf32, #tpu.memory_space<vmem>>, vector<1x1x32xf32>
    %179 = vector.shape_cast %178 : vector<1x1x32xf32> to vector<1x32xf32>
    %cst_88 = arith.constant dense<0.000000e+00> : vector<2x8xf32>
    %180 = vector.multi_reduction <add>, %175, %cst_88 [2] : vector<2x8x32xf32> to vector<2x8xf32>
    %181 = vector.shape_cast %180 : vector<2x8xf32> to vector<2x8x1xf32>
    %cst_89 = arith.constant 3.200000e+01 : f32
    %182 = vector.broadcast %cst_89 : f32 to vector<2x8x1xf32>
    %183 = arith.divf %181, %182 : vector<2x8x1xf32>
    %184 = vector.broadcast %183 : vector<2x8x1xf32> to vector<2x8x32xf32>
    %185 = arith.subf %175, %184 : vector<2x8x32xf32>
    %186 = arith.mulf %185, %185 : vector<2x8x32xf32>
    %cst_90 = arith.constant dense<0.000000e+00> : vector<2x8xf32>
    %187 = vector.multi_reduction <add>, %186, %cst_90 [2] : vector<2x8x32xf32> to vector<2x8xf32>
    %188 = vector.shape_cast %187 : vector<2x8xf32> to vector<2x8x1xf32>
    %cst_91 = arith.constant 3.200000e+01 : f32
    %189 = vector.broadcast %cst_91 : f32 to vector<2x8x1xf32>
    %190 = arith.divf %188, %189 : vector<2x8x1xf32>
    %191 = vector.broadcast %183 : vector<2x8x1xf32> to vector<2x8x32xf32>
    %192 = arith.subf %175, %191 : vector<2x8x32xf32>
    %cst_92 = arith.constant 9.99999974E-6 : f32
    %193 = vector.broadcast %cst_92 : f32 to vector<2x8x1xf32>
    %194 = arith.addf %190, %193 : vector<2x8x1xf32>
    %195 = math.rsqrt %194 : vector<2x8x1xf32>
    %196 = vector.broadcast %195 : vector<2x8x1xf32> to vector<2x8x32xf32>
    %197 = arith.mulf %192, %196 : vector<2x8x32xf32>
    %198 = vector.shape_cast %177 : vector<1x32xf32> to vector<1x1x32xf32>
    %199 = vector.broadcast %198 : vector<1x1x32xf32> to vector<2x8x32xf32>
    %200 = arith.mulf %197, %199 : vector<2x8x32xf32>
    %201 = vector.shape_cast %179 : vector<1x32xf32> to vector<1x1x32xf32>
    %202 = vector.broadcast %201 : vector<1x1x32xf32> to vector<2x8x32xf32>
    %203 = arith.addf %200, %202 : vector<2x8x32xf32>
    %204 = vector.shape_cast %203 : vector<2x8x32xf32> to vector<16x32xf32>
    %205 = arith.truncf %204 : vector<16x32xf32> to vector<16x32xbf16>
    %c0_93 = arith.constant 0 : index
    %c0_94 = arith.constant 0 : index
    %c0_95 = arith.constant 0 : index
    %206 = vector.load %arg16[%c0_93, %c0_94, %c0_95] : memref<1x32x128xbf16, #tpu.memory_space<vmem>>, vector<1x32x128xbf16>
    %207 = vector.shape_cast %206 : vector<1x32x128xbf16> to vector<32x128xbf16>
    %cst_96 = arith.constant dense<0.000000e+00> : vector<16x128xf32>
    %208 = tpu.matmul %205, %207, %cst_96 {dimension_numbers = #tpu.dot_dimension_numbers<[1], [0], [0], [1], [0, 0, 1, 1], [], []>} : vector<16x32xbf16>, vector<32x128xbf16>, vector<16x128xf32> -> vector<16x128xf32>
    %c0_97 = arith.constant 0 : index
    %c0_98 = arith.constant 0 : index
    %c0_99 = arith.constant 0 : index
    %209 = vector.load %arg17[%c0_97, %c0_98, %c0_99] : memref<1x1x128xf32, #tpu.memory_space<vmem>>, vector<1x1x128xf32>
    %210 = vector.shape_cast %209 : vector<1x1x128xf32> to vector<1x128xf32>
    %211 = vector.broadcast %210 : vector<1x128xf32> to vector<16x128xf32>
    %212 = arith.addf %208, %211 : vector<16x128xf32>
    %cst_100 = arith.constant 1.702000e+00 : f32
    %213 = vector.broadcast %cst_100 : f32 to vector<16x128xf32>
    %214 = arith.mulf %213, %212 : vector<16x128xf32>
    %215 = arith.negf %214 : vector<16x128xf32>
    %216 = math.exp %215 : vector<16x128xf32>
    %cst_101 = arith.constant 1.000000e+00 : f32
    %217 = vector.broadcast %cst_101 : f32 to vector<16x128xf32>
    %218 = arith.addf %217, %216 : vector<16x128xf32>
    %219 = arith.divf %217, %218 : vector<16x128xf32>
    %220 = arith.mulf %212, %219 : vector<16x128xf32>
    %221 = arith.truncf %220 : vector<16x128xf32> to vector<16x128xbf16>
    %c0_102 = arith.constant 0 : index
    %c0_103 = arith.constant 0 : index
    %c0_104 = arith.constant 0 : index
    %222 = vector.load %arg18[%c0_102, %c0_103, %c0_104] : memref<1x128x32xbf16, #tpu.memory_space<vmem>>, vector<1x128x32xbf16>
    %223 = vector.shape_cast %222 : vector<1x128x32xbf16> to vector<128x32xbf16>
    %cst_105 = arith.constant dense<0.000000e+00> : vector<16x32xf32>
    %224 = tpu.matmul %221, %223, %cst_105 {dimension_numbers = #tpu.dot_dimension_numbers<[1], [0], [0], [1], [0, 0, 1, 1], [], []>} : vector<16x128xbf16>, vector<128x32xbf16>, vector<16x32xf32> -> vector<16x32xf32>
    %c0_106 = arith.constant 0 : index
    %c0_107 = arith.constant 0 : index
    %c0_108 = arith.constant 0 : index
    %225 = vector.load %arg19[%c0_106, %c0_107, %c0_108] : memref<1x1x32xf32, #tpu.memory_space<vmem>>, vector<1x1x32xf32>
    %226 = vector.shape_cast %225 : vector<1x1x32xf32> to vector<1x32xf32>
    %227 = vector.broadcast %226 : vector<1x32xf32> to vector<16x32xf32>
    %228 = arith.addf %224, %227 : vector<16x32xf32>
    %229 = vector.shape_cast %228 : vector<16x32xf32> to vector<2x8x32xf32>
    %230 = arith.addf %175, %229 : vector<2x8x32xf32>
    %c0_109 = arith.constant 0 : index
    %c0_110 = arith.constant 0 : index
    %c0_111 = arith.constant 0 : index
    %231 = vector.load %arg26[%c0_109, %c0_110, %c0_111] : memref<2x8x32xf32, #tpu.memory_space<vmem>>, vector<2x8x32xf32>
    tpu.vector_store %arg26[%c0_109, %c0_110, %c0_111], %230 {strides = array<i32>} : memref<2x8x32xf32, #tpu.memory_space<vmem>>, vector<2x8x32xf32>,
    %c1_i32 = arith.constant 1 : i32
    %232 = arith.cmpi eq, %arg1, %c1_i32 : i32
    %233 = arith.extui %232 : i1 to i32
    %c0_i32_112 = arith.constant 0 : i32
    %234 = arith.cmpi ne, %233, %c0_i32_112 : i32
    scf.if %234 {
      %c0_113 = arith.constant 0 : index
      %c0_114 = arith.constant 0 : index
      %c0_115 = arith.constant 0 : index
      %235 = vector.load %arg26[%c0_113, %c0_114, %c0_115] : memref<2x8x32xf32, #tpu.memory_space<vmem>>, vector<2x1x32xf32>
      %236 = vector.shape_cast %235 : vector<2x1x32xf32> to vector<2x32xf32>
      %c0_116 = arith.constant 0 : index
      %c0_117 = arith.constant 0 : index
      %237 = vector.load %arg20[%c0_116, %c0_117] : memref<1x32xf32, #tpu.memory_space<vmem>>, vector<1x32xf32>
      %c0_118 = arith.constant 0 : index
      %c0_119 = arith.constant 0 : index
      %238 = vector.load %arg21[%c0_118, %c0_119] : memref<1x32xf32, #tpu.memory_space<vmem>>, vector<1x32xf32>
      %cst_120 = arith.constant dense<0.000000e+00> : vector<2xf32>
      %239 = vector.multi_reduction <add>, %236, %cst_120 [1] : vector<2x32xf32> to vector<2xf32>
      %240 = vector.shape_cast %239 : vector<2xf32> to vector<2x1xf32>
      %cst_121 = arith.constant 3.200000e+01 : f32
      %241 = vector.broadcast %cst_121 : f32 to vector<2x1xf32>
      %242 = arith.divf %240, %241 : vector<2x1xf32>
      %243 = vector.broadcast %242 : vector<2x1xf32> to vector<2x32xf32>
      %244 = arith.subf %236, %243 : vector<2x32xf32>
      %245 = arith.mulf %244, %244 : vector<2x32xf32>
      %cst_122 = arith.constant dense<0.000000e+00> : vector<2xf32>
      %246 = vector.multi_reduction <add>, %245, %cst_122 [1] : vector<2x32xf32> to vector<2xf32>
      %247 = vector.shape_cast %246 : vector<2xf32> to vector<2x1xf32>
      %cst_123 = arith.constant 3.200000e+01 : f32
      %248 = vector.broadcast %cst_123 : f32 to vector<2x1xf32>
      %249 = arith.divf %247, %248 : vector<2x1xf32>
      %250 = vector.broadcast %242 : vector<2x1xf32> to vector<2x32xf32>
      %251 = arith.subf %236, %250 : vector<2x32xf32>
      %cst_124 = arith.constant 9.99999974E-6 : f32
      %252 = vector.broadcast %cst_124 : f32 to vector<2x1xf32>
      %253 = arith.addf %249, %252 : vector<2x1xf32>
      %254 = math.rsqrt %253 : vector<2x1xf32>
      %255 = vector.broadcast %254 : vector<2x1xf32> to vector<2x32xf32>
      %256 = arith.mulf %251, %255 : vector<2x32xf32>
      %257 = vector.broadcast %237 : vector<1x32xf32> to vector<2x32xf32>
      %258 = arith.mulf %256, %257 : vector<2x32xf32>
      %259 = vector.broadcast %238 : vector<1x32xf32> to vector<2x32xf32>
      %260 = arith.addf %258, %259 : vector<2x32xf32>
      %261 = arith.truncf %260 : vector<2x32xf32> to vector<2x32xbf16>
      %c0_125 = arith.constant 0 : index
      %c0_126 = arith.constant 0 : index
      %262 = vector.load %arg22[%c0_125, %c0_126] : memref<32x16xbf16, #tpu.memory_space<vmem>>, vector<32x16xbf16>
      %cst_127 = arith.constant dense<0.000000e+00> : vector<2x16xf32>
      %263 = tpu.matmul %261, %262, %cst_127 {dimension_numbers = #tpu.dot_dimension_numbers<[1], [0], [0], [1], [0, 0, 1, 1], [], []>} : vector<2x32xbf16>, vector<32x16xbf16>, vector<2x16xf32> -> vector<2x16xf32>
      %264 = arith.mulf %263, %263 : vector<2x16xf32>
      %cst_128 = arith.constant dense<0.000000e+00> : vector<2xf32>
      %265 = vector.multi_reduction <add>, %264, %cst_128 [1] : vector<2x16xf32> to vector<2xf32>
      %266 = vector.shape_cast %265 : vector<2xf32> to vector<2x1xf32>
      %cst_129 = arith.constant 9.99999996E-13 : f32
      %267 = vector.broadcast %cst_129 : f32 to vector<2x1xf32>
      %268 = arith.addf %266, %267 : vector<2x1xf32>
      %269 = math.rsqrt %268 : vector<2x1xf32>
      %270 = vector.broadcast %269 : vector<2x1xf32> to vector<2x16xf32>
      %271 = arith.mulf %263, %270 : vector<2x16xf32>
      %c0_130 = arith.constant 0 : index
      %c0_131 = arith.constant 0 : index
      %272 = memref.load %arg24[%c0_130, %c0_131] : memref<1x1xf32, #tpu.memory_space<smem>>
      %273 = arith.truncf %271 : vector<2x16xf32> to vector<2x16xbf16>
      %c0_132 = arith.constant 0 : index
      %c0_133 = arith.constant 0 : index
      %274 = vector.load %arg23[%c0_132, %c0_133] : memref<16x128xbf16, #tpu.memory_space<vmem>>, vector<16x128xbf16>
      %cst_134 = arith.constant dense<0.000000e+00> : vector<2x128xf32>
      %275 = tpu.matmul %273, %274, %cst_134 {dimension_numbers = #tpu.dot_dimension_numbers<[1], [0], [0], [1], [0, 0, 1, 1], [], []>} : vector<2x16xbf16>, vector<16x128xbf16>, vector<2x128xf32> -> vector<2x128xf32>
      %276 = vector.broadcast %272 : f32 to vector<2x128xf32>
      %277 = arith.mulf %276, %275 : vector<2x128xf32>
      %c0_135 = arith.constant 0 : index
      %c0_136 = arith.constant 0 : index
      %278 = vector.load %arg25[%c0_135, %c0_136] : memref<2x128xf32, #tpu.memory_space<vmem>>, vector<2x128xf32>
      tpu.vector_store %arg25[%c0_135, %c0_136], %277 {strides = array<i32>} : memref<2x128xf32, #tpu.memory_space<vmem>>, vector<2x128xf32>,
    } else {
    }
    return
  }
  func.func @transform_0(%arg0: i32, %arg1: i32) -> (i32, i32, i32) {
    %c0_i32 = arith.constant 0 : i32
    %c0_i32_0 = arith.constant 0 : i32
    %c0_i32_1 = arith.constant 0 : i32
    return %arg0, %c0_i32, %c0_i32_0 : i32, i32, i32
  }
  func.func @transform_1(%arg0: i32, %arg1: i32) -> (i32, i32) {
    %c0_i32 = arith.constant 0 : i32
    %c0_i32_0 = arith.constant 0 : i32
    %c0_i32_1 = arith.constant 0 : i32
    return %c0_i32, %c0_i32_0 : i32, i32
  }
  func.func @transform_2(%arg0: i32, %arg1: i32) -> (i32, i32) {
    %c0_i32 = arith.constant 0 : i32
    %c0_i32_0 = arith.constant 0 : i32
    %c0_i32_1 = arith.constant 0 : i32
    return %c0_i32, %c0_i32_0 : i32, i32
  }
  func.func @transform_3(%arg0: i32, %arg1: i32) -> (i32, i32) {
    %c0_i32 = arith.constant 0 : i32
    %c0_i32_0 = arith.constant 0 : i32
    %c0_i32_1 = arith.constant 0 : i32
    return %c0_i32, %c0_i32_0 : i32, i32
  }
  func.func @transform_4(%arg0: i32, %arg1: i32) -> (i32, i32) {
    %c0_i32 = arith.constant 0 : i32
    %c0_i32_0 = arith.constant 0 : i32
    %c0_i32_1 = arith.constant 0 : i32
    return %c0_i32, %c0_i32_0 : i32, i32
  }
  func.func @transform_5(%arg0: i32, %arg1: i32) -> (i32, i32, i32) {
    %c0_i32 = arith.constant 0 : i32
    %c0_i32_0 = arith.constant 0 : i32
    %c0_i32_1 = arith.constant 0 : i32
    return %arg1, %c0_i32, %c0_i32_0 : i32, i32, i32
  }
  func.func @transform_6(%arg0: i32, %arg1: i32) -> (i32, i32, i32) {
    %c0_i32 = arith.constant 0 : i32
    %c0_i32_0 = arith.constant 0 : i32
    %c0_i32_1 = arith.constant 0 : i32
    return %arg1, %c0_i32, %c0_i32_0 : i32, i32, i32
  }
  func.func @transform_7(%arg0: i32, %arg1: i32) -> (i32, i32, i32) {
    %c0_i32 = arith.constant 0 : i32
    %c0_i32_0 = arith.constant 0 : i32
    %c0_i32_1 = arith.constant 0 : i32
    return %arg1, %c0_i32, %c0_i32_0 : i32, i32, i32
  }
  func.func @transform_8(%arg0: i32, %arg1: i32) -> (i32, i32, i32) {
    %c0_i32 = arith.constant 0 : i32
    %c0_i32_0 = arith.constant 0 : i32
    %c0_i32_1 = arith.constant 0 : i32
    return %arg1, %c0_i32, %c0_i32_0 : i32, i32, i32
  }
  func.func @transform_9(%arg0: i32, %arg1: i32) -> (i32, i32, i32) {
    %c0_i32 = arith.constant 0 : i32
    %c0_i32_0 = arith.constant 0 : i32
    %c0_i32_1 = arith.constant 0 : i32
    return %arg1, %c0_i32, %c0_i32_0 : i32, i32, i32
  }
  func.func @transform_10(%arg0: i32, %arg1: i32) -> (i32, i32, i32) {
    %c0_i32 = arith.constant 0 : i32
    %c0_i32_0 = arith.constant 0 : i32
    %c0_i32_1 = arith.constant 0 : i32
    return %arg1, %c0_i32, %c0_i32_0 : i32, i32, i32
  }
  func.func @transform_11(%arg0: i32, %arg1: i32) -> (i32, i32, i32) {
    %c0_i32 = arith.constant 0 : i32
    %c0_i32_0 = arith.constant 0 : i32
    %c0_i32_1 = arith.constant 0 : i32
    return %arg1, %c0_i32, %c0_i32_0 : i32, i32, i32
  }
  func.func @transform_12(%arg0: i32, %arg1: i32) -> (i32, i32, i32) {
    %c0_i32 = arith.constant 0 : i32
    %c0_i32_0 = arith.constant 0 : i32
    %c0_i32_1 = arith.constant 0 : i32
    return %arg1, %c0_i32, %c0_i32_0 : i32, i32, i32
  }
  func.func @transform_13(%arg0: i32, %arg1: i32) -> (i32, i32, i32) {
    %c0_i32 = arith.constant 0 : i32
    %c0_i32_0 = arith.constant 0 : i32
    %c0_i32_1 = arith.constant 0 : i32
    return %arg1, %c0_i32, %c0_i32_0 : i32, i32, i32
  }
  func.func @transform_14(%arg0: i32, %arg1: i32) -> (i32, i32, i32) {
    %c0_i32 = arith.constant 0 : i32
    %c0_i32_0 = arith.constant 0 : i32
    %c0_i32_1 = arith.constant 0 : i32
    return %arg1, %c0_i32, %c0_i32_0 : i32, i32, i32
  }
  func.func @transform_15(%arg0: i32, %arg1: i32) -> (i32, i32, i32) {
    %c0_i32 = arith.constant 0 : i32
    %c0_i32_0 = arith.constant 0 : i32
    %c0_i32_1 = arith.constant 0 : i32
    return %arg1, %c0_i32, %c0_i32_0 : i32, i32, i32
  }
  func.func @transform_16(%arg0: i32, %arg1: i32) -> (i32, i32, i32) {
    %c0_i32 = arith.constant 0 : i32
    %c0_i32_0 = arith.constant 0 : i32
    %c0_i32_1 = arith.constant 0 : i32
    return %arg1, %c0_i32, %c0_i32_0 : i32, i32, i32
  }
  func.func @transform_17(%arg0: i32, %arg1: i32) -> (i32, i32, i32) {
    %c0_i32 = arith.constant 0 : i32
    %c0_i32_0 = arith.constant 0 : i32
    %c0_i32_1 = arith.constant 0 : i32
    return %arg1, %c0_i32, %c0_i32_0 : i32, i32, i32
  }
  func.func @transform_18(%arg0: i32, %arg1: i32) -> (i32, i32) {
    %c0_i32 = arith.constant 0 : i32
    %c0_i32_0 = arith.constant 0 : i32
    %c0_i32_1 = arith.constant 0 : i32
    return %c0_i32, %c0_i32_0 : i32, i32
  }
  func.func @transform_19(%arg0: i32, %arg1: i32) -> (i32, i32) {
    %c0_i32 = arith.constant 0 : i32
    %c0_i32_0 = arith.constant 0 : i32
    %c0_i32_1 = arith.constant 0 : i32
    return %c0_i32, %c0_i32_0 : i32, i32
  }
  func.func @transform_20(%arg0: i32, %arg1: i32) -> (i32, i32) {
    %c0_i32 = arith.constant 0 : i32
    %c0_i32_0 = arith.constant 0 : i32
    %c0_i32_1 = arith.constant 0 : i32
    return %c0_i32, %c0_i32_0 : i32, i32
  }
  func.func @transform_21(%arg0: i32, %arg1: i32) -> (i32, i32) {
    %c0_i32 = arith.constant 0 : i32
    %c0_i32_0 = arith.constant 0 : i32
    %c0_i32_1 = arith.constant 0 : i32
    return %c0_i32, %c0_i32_0 : i32, i32
  }
  func.func @transform_22(%arg0: i32, %arg1: i32) -> (i32, i32) {
    %c0_i32 = arith.constant 0 : i32
    %c0_i32_0 = arith.constant 0 : i32
    %c0_i32_1 = arith.constant 0 : i32
    return %c0_i32, %c0_i32_0 : i32, i32
  }
  func.func @transform_23(%arg0: i32, %arg1: i32) -> (i32, i32) {
    %c0_i32 = arith.constant 0 : i32
    %c0_i32_0 = arith.constant 0 : i32
    return %arg0, %c0_i32 : i32, i32
  }
}

</mosaic_0001>

<bundles_post_ra>
// kernel: custom_clip_vptd_forward.2
= control target key start
LH: loop header
LB: loop body
LE: loop exit
PB: predicated region body
PF: predicated region fallthrough
CT: control target
= control target key end

     0   :  { %vm115_vm0 = vcmask 523264   ;;  %vm146_vm1 = vcmask 257024   ;;  %s270_s1 = inlined_call_operand.vmem [shape: bf16[192,32], index: 1, kind: input, shape index: {}]   ;;  %s271_s0 = inlined_call_operand.vmem [shape: bf16[8,192], index: 0, kind: input, shape index: {}]   ;;  %s272_s2 = inlined_call_operand.vmem [shape: bf16[8,32], index: 2, kind: output, shape index: {}]  }
   0x1   :  { %v208_v0 = vld [vmem:[%s270_s1 + $0x38] sm:$0xff]  ;;  %v207_v2 = vld [vmem:[%s270_s1 + $0x30] sm:$0xff]  ;;  %v206_v4 = vld [vmem:[%s270_s1 + $0x28] sm:$0xff] }
   0x2   :  { %v212_v1 = vld [vmem:[%s270_s1 + $0x58] sm:$0xff]  ;;  %119 = vmatpush.bf16.msra.mxu0 %v208_v0  ;;  %v211_v3 = vld [vmem:[%s270_s1 + $0x50] sm:$0xff]  ;;  %v210_v5 = vld [vmem:[%s270_s1 + $0x48] sm:$0xff] }
   0x3   :  { %136 = vmatpush.bf16.msra.mxu1 %v212_v1  ;;  %v12_v6 = vld [vmem:[%s271_s0] sm:$0xff]  ;;  %v204_v10 = vld [vmem:[%s270_s1 + $0x18] sm:$0xff]  ;;  %v203_v12 = vld [vmem:[%s270_s1 + $0x10] sm:$0xff] }
   0x4   :  { %v205_v7 = vld [vmem:[%s270_s1 + $0x20] sm:$0xff]  ;;  %v39_v8 = vunpack.c.h.b16 %v12_v6  ;;  %v202_v13 = vld [vmem:[%s270_s1 + $0x8] sm:$0xff]  ;;  %v38_v14 = vunpack.c.l.b16 %v12_v6 }
   0x5   :  { %v209_v9 = vld [vmem:[%s270_s1 + $0x40] sm:$0xff] }
   0x6   :  { %120 = vmatpush.bf16.msra.mxu0 %v207_v2  ;;  %v41_v11 = vpack.c.b16 %v39_v8, %v39_v8  ;;  %v201_v15 = vld [vmem:[%s270_s1] sm:$0xff]  ;;  %v40_v16 = vpack.c.b16 %v38_v14, %v38_v14 }
   0x7   :  { %137 = vmatpush.bf16.msra.mxu1 %v211_v3 }
   0xa   :  { %121 = vmatpush.bf16.msra.mxu0 %v206_v4 }
   0xb   :  { %138 = vmatpush.bf16.msra.mxu1 %v210_v5 }
   0xe   :  { %122 = vmatpush.bf16.msra.mxu0 %v205_v7 }
   0xf   :  { %139 = vmatpush.bf16.msra.mxu1 %v209_v9 }
  0x12   :  { %123 = vmatpush.bf16.msra.mxu0 %v204_v10  ;;  %200 = vmatmul.msk.bf16.vlgmr.msra.gmra.mxu1 %vm115_vm0, %v41_v11 }
  0x16   :  { %124 = vmatpush.bf16.msra.mxu0 %v203_v12 }
  0x1a   :  { %125 = vmatpush.bf16.msra.mxu0 %v202_v13 }
  0x1e   :  { %126 = vmatpush.bf16.msra.mxu0 %v201_v15 }
  0x21   :  { %127 = vmatmul.bf16.vlgmr.msra.gmra.mxu0 %v40_v16 }
  0x8f   :  { %v141_v17 = vpop.f32.mrf.mxu1 }
  0x97   :  { %v143_v18 = vpop.f32.mrf.mxu1 }
  0x9e   :  { %v128_v19 = vpop.f32.mrf.mxu0 }
  0x9f   :  { %v142_v20 = vadd.f32 %v141_v17, %v128_v19 }
  0xa1   :  { %v145_v21 = vpack.c.bf16 %v142_v20, %v142_v20 }
  0xa3   :  { %147 = vst.msk [vmem:[%s272_s2] sm:$0xf] %vm146_vm1, %v145_v21 }
  0xa6   :  { %v130_v22 = vpop.f32.mrf.mxu0 }

// kernel: custom_clip_vptd_forward.3
= control target key start
LH: loop header
LB: loop body
LE: loop exit
PB: predicated region body
PF: predicated region fallthrough
CT: control target
= control target key end

     0   :  { %s3274_s0 = inlined_call_operand.vmem [shape: bf16[2,4,32], index: 0, kind: input, shape index: {}]   ;;  %s3275_s1 = inlined_call_operand.vmem [shape: f32[1,32], index: 1, kind: input, shape index: {}]   ;;  %s3276_s2 = inlined_call_operand.vmem [shape: f32[5,32], index: 2, kind: input, shape index: {}]   ;;  %s3277_s3 = inlined_call_operand.vmem [shape: f32[1,32], index: 3, kind: input, shape index: {}]   ;;  %s3278_s4 = inlined_call_operand.vmem [shape: f32[1,32], index: 4, kind: input, shape index: {}]   ;;  %s3279_s5 = inlined_call_operand.vmem [shape: f32[2,2,32], index: 5, kind: input, shape index: {}]   ;;  %s3280_s6 = inlined_call_operand.vmem [shape: f32[2,1,32], index: 6, kind: input, shape index: {}]   ;;  %s3281_s7 = inlined_call_operand.vmem [shape: f32[2,1,32], index: 7, kind: input, shape index: {}]   ;;  %s3282_s8 = inlined_call_operand.vmem [shape: bf16[2,32,96], index: 8, kind: input, shape index: {}]   ;;  %s3283_s9 = inlined_call_operand.vmem [shape: f32[2,1,96], index: 9, kind: input, shape index: {}]   ;;  %s3284_s10 = inlined_call_operand.vmem [shape: bf16[2,32,32], index: 10, kind: input, shape index: {}]   ;;  %s3285_s11 = inlined_call_operand.vmem [shape: f32[2,1,32], index: 11, kind: input, shape index: {}]   ;;  %s3286_s12 = inlined_call_operand.vmem [shape: f32[2,1,32], index: 12, kind: input, shape index: {}]   ;;  %s3287_s13 = inlined_call_operand.vmem [shape: f32[2,1,32], index: 13, kind: input, shape index: {}]   ;;  %s3288_s14 = inlined_call_operand.vmem [shape: bf16[2,32,128], index: 14, kind: input, shape index: {}]   ;;  %s3289_s15 = inlined_call_operand.vmem [shape: f32[2,1,128], index: 15, kind: input, shape index: {}]   ;;  %s3290_s16 = inlined_call_operand.vmem [shape: bf16[2,128,32], index: 16, kind: input, shape index: {}]   ;;  %s3291_s17 = inlined_call_operand.vmem [shape: f32[2,1,32], index: 17, kind: input, shape index: {}]   ;;  %s3292_s18 = inlined_call_operand.vmem [shape: f32[1,32], index: 18, kind: input, shape index: {}]   ;;  %s3293_s19 = inlined_call_operand.vmem [shape: f32[1,32], index: 19, kind: input, shape index: {}]   ;;  %s3294_s20 = inlined_call_operand.vmem [shape: bf16[32,16], index: 20, kind: input, shape index: {}]   ;;  %s3295_s21 = inlined_call_operand.vmem [shape: bf16[16,128], index: 21, kind: input, shape index: {}]   ;;  %s3296_s22 = inlined_call_operand.<no memory space> [shape: f32[1,1], index: 22, kind: input, shape index: {}]   ;;  %s3297_s23 = inlined_call_operand.hbm [shape: f32[2,128], index: 23, kind: output, shape index: {}]  }
   0x1   :  { %3306 = sst [smem:[#allocation12_spill]] %s3274_s0 }
   0x2   :  { %3307 = sst [smem:[#allocation13_spill]] %s3275_s1 }
   0x3   :  { %3308 = sst [smem:[#allocation14_spill]] %s3276_s2 }
   0x4   :  { %3309 = sst [smem:[#allocation15_spill]] %s3277_s3 }
   0x5   :  { %3310 = sst [smem:[#allocation16_spill]] %s3278_s4 }
   0x6   :  { %3311 = sst [smem:[#allocation17_spill]] %s3279_s5 }
   0x7   :  { %3312 = sst [smem:[#allocation18_spill]] %s3280_s6 }
   0x8   :  { %3313 = sst [smem:[#allocation19_spill]] %s3281_s7 }
   0x9   :  { %3314 = sst [smem:[#allocation20_spill]] %s3292_s18 }
   0xa   :  { %3315 = sst [smem:[#allocation21_spill]] %s3293_s19 }
   0xb   :  { %3316 = sst [smem:[#allocation22_spill]] %s3294_s20 }
   0xc   :  { %3317 = sst [smem:[#allocation23_spill]] %s3295_s21 }
   0xd   :  { %3318 = sst [smem:[#allocation24_spill]] %s3297_s23 }
   0xe   :  { %28 = sst [smem:[#allocation4]] %s3296_s22 }
   0xf   :  { %29 = vsyncpa [#allocation6], 0  ;;  %s2875_s24 = smov 0   ;;  %s2877_s25 = smov 0  }
  0x10   :  { %s2879_s5 = smov 0  }
  0x11 LB: > { %3319 = sst [smem:[#allocation8_spill]] %s2726_s24  ;;  %s44_s1 = sadd.s32 1, %s2730_s25  ;;  %s2734_s5 = sphi %s2879_s5, %s35_s5   ;;  %s2730_s25 = sphi %s2877_s25, %s3350_s25   ;;  %s2726_s24 = sphi %s2875_s24, %s3349_s24  }
  0x12   : > { %3320 = sst [smem:[#allocation9_spill]] %s2730_s25  ;;  %p45_p0 = scmp.ge.s32.totalorder %s44_s1, 2 }
  0x13   : > { %3321 = sst [smem:[#allocation10_spill]] %s2734_s5  ;;  %p2427_p1 = scmp.ge.s32.totalorder %s2734_s5, 1 }
  0x14   : > { %p765_p2 = scmp.lt.s32.totalorder %s2734_s5, 3  ;;  %s3352_s1 = smov (%p45_p0, %s44_s1), 0 }
  0x15   : > { %3322 = sst [smem:[#allocation11_spill]] %s3352_s1 }
  0x16   : > { %p766_p3 = pnand %p2427_p1, %p765_p2 }
  0x17   : > { %p878_p4 = scmp.lt.s32.totalorder (!%p766_p3), %s2726_s24, 1  ;;  %s3324_s0 = sld [smem:[#allocation17_spill]] (!%p766_p3) }
  0x18   : > { %769 = sbr.rel (%p766_p3) target bundleno = 3669 (0xe55), region = 112  ;;  %s3326_s5 = sld [smem:[#allocation8_spill]] (!%p766_p3) }
  0x1d   : > { %s2898_s26 = scalar_select %p878_p4, %s2726_s24, 1 }
  0x1e   : > { %p2437_p5 = scmp.ne.s32.totalorder %s3326_s5, 0 }
  0x1f   : > { %s2428_s2 = sshll.u32 %s2898_s26, 1  ;;  %s2529_s23 = sshll.u32 %s2898_s26, 4 }
  0x20   : > { %s2908_s4 = scalar_lea.vmem %s3324_s0, %s2428_s2  ;;  %s2922_s24 = scalar_lea.vmem %s3282_s8, %s2529_s23 }
  0x21   : > { %s2927_s7 = scalar_lea.vmem %s3284_s10, %s2529_s23  ;;  %s906_s0 = scalar_lea.vmem %s3286_s12, %s2898_s26 }
  0x22   : > { %s2944_s19 = scalar_lea.vmem %s3288_s14, %s2529_s23  ;;  %s2532_s28 = sshll.u32 %s2898_s26, 6 }
  0x23   : > { %s2954_s22 = scalar_lea.vmem %s3290_s16, %s2532_s28  ;;  %s925_s21 = scalar_lea.vmem %s3291_s17, %s2898_s26 }
  0x24   : > { %930 = sbr.rel (%p2437_p5) target bundleno = 331 (0x14b), region = 116  ;;  %s3327_s20 = sld [smem:[#allocation13_spill]] (!%p2437_p5) }
  0x25   : > { %s3328_s27 = sld [smem:[#allocation14_spill]] (!%p2437_p5) }
  0x26   : > { %s3329_s29 = sld [smem:[#allocation12_spill]] (!%p2437_p5) }
  0x27   : > { %s3330_s18 = sld [smem:[#allocation15_spill]] (!%p2437_p5) }
  0x28   : > { %s3331_s6 = sld [smem:[#allocation16_spill]] (!%p2437_p5) }
  0x29   : > { %vm939_vm0 = vcmask 253952   ;;  %vm982_vm1 = vcmask 257024   ;;  %v2736_v13 = vmov 32.0   ;;  %vm931_vm3 = vcmask 261120  }
  0x2a   : > { %v934_v0 = vld [vmem:[%s3327_s20] sm:$0x1]  ;;  %2608 = vrcp.f32 %v2736_v13  ;;  %v2737_v35 = vmov 0.0  }
  0x2b   : > { %v935_v1 = vld [vmem:[%s3328_s27] sm:$0x1]  ;;  %v977_v6 = vld [vmem:[%s3328_s27 + $0x1] sm:$0xf]  ;;  %932 = vst.msk [vmem:[#allocation2] sm:$0xff] %vm931_vm3, %v2737_v35 }
  0x2c   : > { %v936_v2 = vadd.f32 %v935_v1, %v934_v0  ;;  %v973_v3 = vld [vmem:[%s3329_s29] sm:$0x3]  ;;  %v974_v4 = vld [vmem:[%s3329_s29 + $0x2] sm:$0x3]  ;;  %933 = vst.msk [vmem:[#allocation2 + $0x8] sm:$0xff] %vm931_vm3, %v2737_v35 }
  0x2d   : > { %v975_v5 = vunpack.c.l.bf16 %v973_v3  ;;  %v976_v7 = vunpack.c.l.bf16 %v974_v4  ;;  %v937_v53 = vld [vmem:[%s3330_s18] sm:$0x1] }
  0x2e   : > { %v940_v8 = vsel %vm939_vm0, %v936_v2, 0.0  ;;  %v938_v57 = vld [vmem:[%s3331_s6] sm:$0x1] }
  0x2f   : > { %941 = vadd.xlane.f32.xlu0 %v940_v8  ;;  %v979_v9 = vadd.f32 %v977_v6, %v976_v7  ;;  %v978_v10 = vadd.f32 %v977_v6, %v975_v5  ;;  %v2606_v1 = vld [vmem:[%s3330_s18] ss:$0 sm:$0xff] }
  0x30   : > { %v2609_v14 = vpop.eup %2608  ;;  %v2607_v4 = vld [vmem:[%s3331_s6] ss:$0 sm:$0xff] }
  0x31   : > { %v986_v11 = vsel %vm982_vm1, %v979_v9, 0.0  ;;  %v983_v12 = vsel %vm982_vm1, %v978_v10, 0.0  ;;  %v944_v15 = vmul.f32 32.0, %v2609_v14  ;;  %vm948_vm2 = vweird.f32 %v2609_v14 }
  0x32   : > { %987 = vadd.xlane.f32.xlu1 %v986_v11 }
  0x33   : > { %v945_v16 = vsub.f32 1.0, %v944_v15 }
  0x35   : > { %v946_v17 = vmul.f32 %v2609_v14, %v945_v16 }
  0x37   : > { %984 = vadd.xlane.f32.xlu0 %v983_v12  ;;  %v947_v18 = vadd.f32 %v2609_v14, %v946_v17 }
  0x39   : > { %v949_v19 = vsel %vm948_vm2, %v2609_v14, %v947_v18 }
  0xa2   : > { %v942_v20 = vpop.xlane.xlu0 %941 }
  0xa3   : > { %v950_v21 = vmul.f32 %v949_v19, %v942_v20 }
  0xa5   : > { %v951_v22 = vsub.f32 %v936_v2, %v950_v21  ;;  %v988_v24 = vpop.xlane.xlu1 %987 }
  0xa6   : > { %v990_v28 = vmul.f32 %v988_v24, %v949_v19 }
  0xa7   : > { %v952_v23 = vmul.f32 %v951_v22, %v951_v22 }
  0xa8   : > { %v2980_v30 = vsub.f32 %v979_v9, %v990_v28 }
  0xa9   : > { %v953_v25 = vsel %vm939_vm0, %v952_v23, 0.0 }
  0xaa   : > { %954 = vadd.xlane.f32.xlu1 %v953_v25  ;;  %v985_v26 = vpop.xlane.xlu0 %984  ;;  %v994_v33 = vmul.f32 %v2980_v30, %v2980_v30 }
  0xab   : > { %v989_v27 = vmul.f32 %v985_v26, %v949_v19 }
  0xac   : > { %v998_v34 = vsel %vm982_vm1, %v994_v33, 0.0 }
  0xad   : > { %v991_v29 = vsub.f32 %v978_v10, %v989_v27 }
  0xaf   : > { %v993_v31 = vmul.f32 %v991_v29, %v991_v29 }
  0xb1   : > { %v995_v32 = vsel %vm982_vm1, %v993_v31, 0.0 }
  0xb2   : > { %996 = vadd.xlane.f32.xlu2 %v995_v32 }
  0xba   : > { %999 = vadd.xlane.f32.xlu2 %v998_v34 }
 0x11d   : > { %v955_v36 = vpop.xlane.xlu1 %954 }
 0x11e   : > { %v956_v37 = vmul.f32 %v955_v36, %v949_v19 }
 0x120   : > { %v957_v38 = vadd.f32 1e-05, %v956_v37 }
 0x122   : > { %2610 = vrsqrt.f32 %v957_v38  ;;  %vm964_vm5 = vweird.f32 %v957_v38 }
 0x125   : > { %v997_v39 = vpop.xlane.xlu2 %996 }
 0x126   : > { %v1001_v40 = vmul.f32 %v997_v39, %v949_v19 }
 0x128   : > { %v2611_v41 = vpop.eup %2610  ;;  %v1003_v42 = vadd.f32 1e-05, %v1001_v40 }
 0x129   : > { %v959_v43 = vmul.f32 %v2611_v41, %v957_v38  ;;  %vm965_vm4 = vweird.f32 %v2611_v41 }
 0x12a   : > { %2612 = vrsqrt.f32 %v1003_v42  ;;  %vm966_vm6 = vmor %vm964_vm5, %vm965_vm4  ;;  %vm1011_vm8 = vweird.f32 %v1003_v42 }
 0x12b   : > { %v960_v44 = vmul.f32 %v2611_v41, %v959_v43 }
 0x12d   : > { %v961_v45 = vmul.f32 0.5, %v960_v44  ;;  %v1000_v46 = vpop.xlane.xlu2 %999 }
 0x12e   : > { %v1002_v47 = vmul.f32 %v1000_v46, %v949_v19 }
 0x12f   : > { %v962_v48 = vsub.f32 1.5, %v961_v45 }
 0x130   : > { %v2613_v49 = vpop.eup %2612  ;;  %v1004_v50 = vadd.f32 1e-05, %v1002_v47 }
 0x131   : > { %v963_v51 = vmul.f32 %v2611_v41, %v962_v48  ;;  %v1006_v52 = vmul.f32 %v2613_v49, %v1003_v42  ;;  %vm1012_vm7 = vweird.f32 %v2613_v49 }
 0x132   : > { %2614 = vrsqrt.f32 %v1004_v50  ;;  %vm1013_vm9 = vmor %vm1011_vm8, %vm1012_vm7  ;;  %vm1021_vm11 = vweird.f32 %v1004_v50 }
 0x133   : > { %v967_v54 = vsel %vm966_vm6, %v2611_v41, %v963_v51  ;;  %v1007_v55 = vmul.f32 %v2613_v49, %v1006_v52 }
 0x134   : > { %v968_v56 = vmul.f32 %v967_v54, %v951_v22 }
 0x135   : > { %v1008_v58 = vmul.f32 0.5, %v1007_v55 }
 0x136   : > { %v969_v59 = vmul.f32 %v968_v56, %v937_v53 }
 0x137   : > { %v1009_v60 = vsub.f32 1.5, %v1008_v58 }
 0x138   : > { %v2615_v61 = vpop.eup %2614  ;;  %v970_v62 = vadd.f32 %v969_v59, %v938_v57 }
 0x139   : > { %v1010_v63 = vmul.f32 %v2613_v49, %v1009_v60  ;;  %v1016_v0 = vmul.f32 %v2615_v61, %v1004_v50  ;;  %vm1022_vm10 = vweird.f32 %v2615_v61 }
 0x13a   : > { %971 = vst.msk [vmem:[#allocation2] sm:$0x1] %vm939_vm0, %v970_v62  ;;  %vm1023_vm12 = vmor %vm1021_vm11, %vm1022_vm10 }
 0x13b   : > { %972 = vst.msk [vmem:[#allocation2 + $0x8] sm:$0x1] %vm939_vm0, %v970_v62  ;;  %v1014_v2 = vsel %vm1013_vm9, %v2613_v49, %v1010_v63  ;;  %v1017_v3 = vmul.f32 %v2615_v61, %v1016_v0 }
 0x13c   : > { %v1025_v5 = vmul.f32 %v1014_v2, %v991_v29 }
 0x13d   : > { %v1018_v6 = vmul.f32 0.5, %v1017_v3 }
 0x13e   : > { %v1030_v7 = vmul.f32 %v2606_v1, %v1025_v5 }
 0x13f   : > { %v1019_v8 = vsub.f32 1.5, %v1018_v6 }
 0x140   : > { %v1035_v9 = vadd.f32 %v2607_v4, %v1030_v7 }
 0x141   : > { %v1020_v10 = vmul.f32 %v2615_v61, %v1019_v8 }
 0x142   : > { %1037 = vst.msk [vmem:[#allocation2 + $0x1] sm:$0xf] %vm982_vm1, %v1035_v9 }
 0x143   : > { %v1024_v11 = vsel %vm1023_vm12, %v2615_v61, %v1020_v10 }
 0x144   : > { %v1026_v12 = vmul.f32 %v1024_v11, %v2980_v30 }
 0x146   : > { %v1031_v13 = vmul.f32 %v2606_v1, %v1026_v12 }
 0x148   : > { %v1036_v14 = vadd.f32 %v2607_v4, %v1031_v13 }
 0x14a   : > { %1038 = vst.msk [vmem:[#allocation2 + $0x9] sm:$0xf] %vm982_vm1, %v1036_v14 }
 0x14b PF: > { %v1039_v15 = vld [vmem:[%s2908_s4] sm:$0x3]  ;;  %vm1040_vm13 = vcmask 254976   ;;  %vm1051_vm14 = vcmask 261120   ;;  %v2738_v20 = vmov 32.0   ;;  %v2534_v37 = vld [vmem:[%s2922_s24 + $0x8] sm:$0xff]  ;;  %s3336_s3 = scalar_lea.vmem %s3283_s9, %s2898_s26 }
 0x14c   : > { %1041 = vst.msk [vmem:[#allocation2 + $0x5] sm:$0x3] %vm1040_vm13, %v1039_v15  ;;  %2624 = vrcp.f32 %v2738_v20  ;;  %1143 = vmatpush.bf16.msra.mxu0 %v2534_v37  ;;  %v2533_v39 = vld [vmem:[%s2922_s24] sm:$0xff]  ;;  %s3332_s5 = sld [smem:[#allocation18_spill]]  ;;  %vm1153_vm6 = vcmask 781312   ;;  %s2739_s24 = smov 96  }
 0x14d   : > { %1042 = vst.msk [vmem:[#allocation2 + $0xd] sm:$0x3] %vm1040_vm13, %v1039_v15  ;;  %s3334_s20 = sld [smem:[#allocation19_spill]]  ;;  %v2618_v4 = vld [vmem:[%s3336_s3] ss:$0 sm:$0xff]  ;;  %s2740_s4 = smov 88  }
 0x14e   : > { %s2743_s30 = smov 80   ;;  %vm1163_vm7 = vcmask 64512   ;;  %vm1266_vm8 = vcmask 1043456   ;;  %s2745_s23 = smov 112  }
 0x14f   : > { %s2748_s28 = smov 72   ;;  %s2749_s1 = smov 104  }
 0x150   : > { %1144 = vmatpush.bf16.msra.mxu0 %v2533_v39  ;;  %v1043_v39 = vlaneseq  ;;  %s2750_s3 = smov 40  }
 0x152   : > { %v2625_v21 = vpop.eup %2624  ;;  %s3333_s25 = scalar_lea.vmem %s3332_s5, %s2898_s26  ;;  %s2741_s5 = smov 56  }
 0x153   : > { %v3006_v16 = vld [vmem:[#allocation2] sm:$0xff]  ;;  %v1059_v22 = vmul.f32 32.0, %v2625_v21  ;;  %vm1063_vm15 = vweird.f32 %v2625_v21  ;;  %s3335_s2 = scalar_lea.vmem %s3334_s20, %s2898_s26  ;;  %s2746_s20 = smov 64  }
 0x154   : > { %v1052_v17 = vsel %vm1051_vm14, %v3006_v16, 0.0  ;;  %v3010_v18 = vld [vmem:[#allocation2 + $0x8] sm:$0xff]  ;;  %v2616_v58 = vld [vmem:[%s3333_s25] ss:$0 sm:$0xff]  ;;  %s2742_s25 = smov 120  }
 0x155   : > { %1053 = vadd.xlane.f32.xlu0 %v1052_v17  ;;  %v1055_v19 = vsel %vm1051_vm14, %v3010_v18, 0.0  ;;  %v1060_v23 = vsub.f32 1.0, %v1059_v22  ;;  %v2617_v63 = vld [vmem:[%s3335_s2] ss:$0 sm:$0xff]  ;;  %s2747_s2 = smov 48  }
 0x157   : > { %v1061_v24 = vmul.f32 %v2625_v21, %v1060_v23 }
 0x159   : > { %v1062_v25 = vadd.f32 %v2625_v21, %v1061_v24 }
 0x15b   : > { %v3014_v26 = vsel %vm1063_vm15, %v2625_v21, %v1062_v25 }
 0x15d   : > { %1056 = vadd.xlane.f32.xlu0 %v1055_v19 }
 0x1c8   : > { %v1054_v27 = vpop.xlane.xlu0 %1053 }
 0x1c9   : > { %v1065_v28 = vmul.f32 %v3014_v26, %v1054_v27 }
 0x1cb   : > { %v1067_v29 = vsub.f32 %v3006_v16, %v1065_v28 }
 0x1cd   : > { %v1069_v30 = vmul.f32 %v1067_v29, %v1067_v29 }
 0x1cf   : > { %v1071_v31 = vsel %vm1051_vm14, %v1069_v30, 0.0 }
 0x1d0   : > { %1072 = vadd.xlane.f32.xlu1 %v1071_v31  ;;  %v1057_v32 = vpop.xlane.xlu0 %1056 }
 0x1d1   : > { %v1066_v33 = vmul.f32 %v3014_v26, %v1057_v32 }
 0x1d3   : > { %v1068_v34 = vsub.f32 %v3010_v18, %v1066_v33 }
 0x1d5   : > { %v1070_v35 = vmul.f32 %v1068_v34, %v1068_v34 }
 0x1d7   : > { %v1074_v36 = vsel %vm1051_vm14, %v1070_v35, 0.0 }
 0x1d8   : > { %1075 = vadd.xlane.f32.xlu1 %v1074_v36 }
 0x243   : > { %v1073_v38 = vpop.xlane.xlu1 %1072 }
 0x244   : > { %v1077_v40 = vmul.f32 %v1073_v38, %v3014_v26 }
 0x246   : > { %v1079_v41 = vadd.f32 1e-05, %v1077_v40  ;;  %v1044_v40 = vand.u32 127, %v1043_v39 }
 0x248   : > { %2626 = vrsqrt.f32 %v1079_v41  ;;  %vm1087_vm1 = vweird.f32 %v1079_v41  ;;  %vm1045_vm9 = vcmp.lt.s32.totalorder %v1044_v40, 7 }
 0x24b   : > { %v1076_v42 = vpop.xlane.xlu1 %1075 }
 0x24c   : > { %v1078_v43 = vmul.f32 %v1076_v42, %v3014_v26  ;;  %v2744_v42 = vmov -1e+30  }
 0x24e   : > { %v2627_v44 = vpop.eup %2626  ;;  %v1080_v45 = vadd.f32 1e-05, %v1078_v43  ;;  %v3070_v43 = vsel %vm1045_vm9, 0.0, %v2744_v42 }
 0x24f   : > { %v1082_v46 = vmul.f32 %v2627_v44, %v1079_v41  ;;  %vm1088_vm0 = vweird.f32 %v2627_v44 }
 0x250   : > { %2628 = vrsqrt.f32 %v1080_v45  ;;  %vm1089_vm2 = vmor %vm1087_vm1, %vm1088_vm0  ;;  %vm1097_vm4 = vweird.f32 %v1080_v45 }
 0x251   : > { %v1083_v47 = vmul.f32 %v2627_v44, %v1082_v46 }
 0x253   : > { %v1084_v48 = vmul.f32 0.5, %v1083_v47 }
 0x255   : > { %v1085_v49 = vsub.f32 1.5, %v1084_v48 }
 0x256   : > { %v2629_v50 = vpop.eup %2628 }
 0x257   : > { %v1086_v51 = vmul.f32 %v2627_v44, %v1085_v49  ;;  %v1092_v52 = vmul.f32 %v2629_v50, %v1080_v45  ;;  %vm1098_vm3 = vweird.f32 %v2629_v50 }
 0x258   : > { %vm1099_vm5 = vmor %vm1097_vm4, %vm1098_vm3 }
 0x259   : > { %v1093_v53 = vmul.f32 %v2629_v50, %v1092_v52  ;;  %v1090_v54 = vsel %vm1089_vm2, %v2627_v44, %v1086_v51 }
 0x25a   : > { %v1101_v57 = vmul.f32 %v1090_v54, %v1067_v29 }
 0x25b   : > { %v1094_v55 = vmul.f32 0.5, %v1093_v53 }
 0x25c   : > { %v1106_v62 = vmul.f32 %v2616_v58, %v1101_v57 }
 0x25d   : > { %v1095_v56 = vsub.f32 1.5, %v1094_v55 }
 0x25e   : > { %v1111_v1 = vadd.f32 %v2617_v63, %v1106_v62 }
 0x25f   : > { %v1096_v59 = vmul.f32 %v2629_v50, %v1095_v56 }
 0x261   : > { %v1100_v60 = vsel %vm1099_vm5, %v2629_v50, %v1096_v59 }
 0x262   : > { %v1102_v61 = vmul.f32 %v1100_v60, %v1068_v34 }
 0x264   : > { %v1107_v0 = vmul.f32 %v2616_v58, %v1102_v61 }
 0x266   : > { %v1112_v2 = vadd.f32 %v2617_v63, %v1107_v0 }
 0x268   : > { %v1113_v3 = vpack.c.bf16 %v1112_v2, %v1111_v1 }
 0x26a   : > { %2446 = vmatmul.msk.bf16.vlgmr.msra.gmra.mxu0 %vm1051_vm14, %v1113_v3 }
 0x2e7   : > { %v1146_v5 = vpop.f32.mrf.mxu0 }
 0x2e8   : > { %v1147_v6 = vadd.f32 %v2618_v4, %v1146_v5 }
 0x2ea   : > { %v1151_v7 = vpack.c.bf16 %v1147_v6, %v1147_v6 }
 0x2ec   : > { %1154 = vst.msk [vmem:[#allocation3] sm:$0xf] %vm1153_vm6, %v1151_v7 }
 0x2ef   : > { %v1148_v8 = vpop.f32.mrf.mxu0 }
 0x2f0   : > { %v1149_v9 = vadd.f32 %v2618_v4, %v1148_v8 }
 0x2f2   : > { %v1152_v10 = vpack.c.bf16 %v1149_v9, %v1149_v9  ;;  %v1457_v9 = vld [vmem:[%s2927_s7 + $0x4] sm:$0xf] }
 0x2f3   : > { %v1156_v11 = vld [vmem:[#allocation3] sm:$0xf] }
 0x2f4   : > { %1155 = vst.msk [vmem:[#allocation3 + $0x4] sm:$0xf] %vm1153_vm6, %v1152_v10  ;;  %v1159_v12 = vunpack.c.l.b16 %v1156_v11  ;;  %v1462_v10 = vsel %vm1266_vm8, %v1457_v9, 0 }
 0x2f6   : > { %v3042_v13 = vpack.c.b16 %v1159_v12, %v1159_v12 }
 0x2f8   : > { %1161 = vrot.lane.b32.xlu0 %v3042_v13, %s2739_s24 }
 0x2fb   : > { %v1157_v14 = vld [vmem:[#allocation3 + $0x4] sm:$0xf] }
 0x2fc   : > { %v2549_v15 = vld [vmem:[#allocation3] sm:$0xff]   ;;  %v1184_v17 = vunpack.c.l.b16 %v1157_v14 }
 0x2fd   : > { %v2550_v19 = vunpack.c.l.b16 %v2549_v15  ;;  %v2551_v22 = vunpack.c.h.b16 %v2549_v15 }
 0x2fe   : > { %v3045_v20 = vpack.c.b16 %v1184_v17, %v1184_v17 }
 0x2ff   : > { %v3047_v21 = vpack.c.b16 %v2550_v19, %v2550_v19  ;;  %v3054_v23 = vpack.c.b16 %v2551_v22, %v2551_v22 }
 0x300   : > { %1186 = vrot.lane.b32.xlu1 %v3045_v20, %s2739_s24 }
 0x301   : > { %1313 = vrot.lane.b32.xlu2 %v3047_v21, %s2740_s4 }
 0x308   : > { %1414 = vrot.lane.b32.xlu1 %v3047_v21, %s2741_s5 }
 0x309   : > { %1311 = vrot.lane.b32.xlu2 %v3047_v21, %s2742_s25 }
 0x310   : > { %1505 = vrot.lane.b32.xlu1 %v3047_v21, %s2743_s30 }
 0x311   : > { %1339 = vrot.lane.b32.xlu2 %v3054_v23, %s2740_s4 }
 0x319   : > { %1337 = vrot.lane.b32.xlu2 %v3054_v23, %s2742_s25 }
 0x35b   : > { %v1314_v24 = vpop.permute.xlu2 %1313 }
 0x35c   : > { %v1319_v25 = vsel %vm1163_vm7, %v1314_v24, 0 }
 0x35d   : > { %1328 = vmatpush.bf16.xpose.msrb.mxu0 %v1319_v25 }
 0x363   : > { %v1312_v27 = vpop.permute.xlu2 %1311 }
 0x364   : > { %2451 = vmatmul.msk.bf16.vlgmr.msrb.gmra.mxu0 %vm1163_vm7, %v1312_v27 }
 0x365   : > { %1471 = vmatpush.bf16.msra.mxu0 %v1462_v10 }
 0x36a   : > { %v1162_v29 = vpop.permute.xlu0 %1161 }
 0x36b   : > { %v1340_v28 = vpop.permute.xlu2 %1339  ;;  %v1168_v30 = vsel %vm1163_vm7, %v1162_v29, 0 }
 0x36c   : > { %v1345_v31 = vsel %vm1163_vm7, %v1340_v28, 0  ;;  %1177 = vmatpush.bf16.xpose.msra.mxu2 %v1168_v30 }
 0x36d   : > { %1354 = vmatpush.bf16.xpose.msra.mxu1 %v1345_v31 }
 0x372   : > { %v1187_v32 = vpop.permute.xlu1 %1186 }
 0x373   : > { %v1338_v33 = vpop.permute.xlu2 %1337  ;;  %2447 = vmatmul.msk.bf16.vlgmr.msra.gmra.mxu2 %vm1163_vm7, %v1156_v11  ;;  %v1192_v34 = vsel %vm1163_vm7, %v1187_v32, 0 }
 0x374   : > { %2452 = vmatmul.msk.bf16.vlgmr.msra.gmra.mxu1 %vm1163_vm7, %v1338_v33  ;;  %1201 = vmatpush.bf16.xpose.msrb.mxu2 %v1192_v34 }
 0x37a   : > { %v1415_v35 = vpop.permute.xlu1 %1414 }
 0x37b   : > { %v1420_v36 = vsel %vm1266_vm8, %v1415_v35, 0 }
 0x37c   : > { %1429 = vmatpush.bf16.msra.mxu2 %v1420_v36 }
 0x382   : > { %v1506_v37 = vpop.permute.xlu1 %1505 }
 0x383   : > { %v1511_v38 = vsel %vm1163_vm7, %v1506_v37, 0  ;;  %2448 = vmatmul.msk.bf16.vlgmr.msrb.gmra.mxu2 %vm1163_vm7, %v1157_v14 }
 0x384   : > { %1520 = vmatpush.bf16.xpose.msrb.mxu2 %v1511_v38 }
 0x3e1   : > { %v1330_v41 = vpop.f32.mrf.mxu0 }
 0x3e2   : > { %v1360_v44 = vmul.f32 0.35355338, %v1330_v41 }
 0x3e4   : > { %v1362_v45 = vadd.f32 %v1360_v44, %v3070_v43 }
 0x3e6   : > { %v1364_v46 = vsel %vm1163_vm7, %v1362_v45, -inf }
 0x3e7   : > { %1365 = vmax.xlane.f32.xlu2 %v1364_v46 }
 0x3e9   : > { %v1332_v47 = vpop.f32.mrf.mxu0 }
 0x3f1   : > { %v1356_v48 = vpop.f32.mrf.mxu1 }
 0x3f2   : > { %v1361_v0 = vmul.f32 0.35355338, %v1356_v48 }
 0x3f4   : > { %v1363_v4 = vadd.f32 %v1361_v0, %v3070_v43 }
 0x3f6   : > { %v1179_v49 = vpop.f32.mrf.mxu2  ;;  %v1367_v6 = vsel %vm1163_vm7, %v1363_v4, -inf }
 0x3f7   : > { %v1207_v50 = vmul.f32 0.35355338, %v1179_v49 }
 0x3f9   : > { %v1358_v51 = vpop.f32.mrf.mxu1  ;;  %v1209_v52 = vadd.f32 %v1207_v50, %v3070_v43 }
 0x3fb   : > { %v1211_v53 = vsel %vm1163_vm7, %v1209_v52, -inf }
 0x3fc   : > { %1212 = vmax.xlane.f32.xlu1 %v1211_v53 }
 0x3fe   : > { %v1181_v54 = vpop.f32.mrf.mxu2 }
 0x3ff   : > { %1503 = vrot.lane.b32.xlu2 %v3047_v21, %s2745_s23 }
 0x406   : > { %v1203_v55 = vpop.f32.mrf.mxu2 }
 0x407   : > { %v1208_v61 = vmul.f32 0.35355338, %v1203_v55 }
 0x409   : > { %v1210_v63 = vadd.f32 %v1208_v61, %v3070_v43 }
 0x40b   : > { %v1214_v1 = vsel %vm1163_vm7, %v1210_v63, -inf }
 0x40e   : > { %v1205_v56 = vpop.f32.mrf.mxu2 }
 0x415   : > { %1261 = vrot.lane.b32.xlu1 %v3042_v13, %s2746_s20 }
 0x41d   : > { %1435 = vrot.lane.b32.xlu1 %v3054_v23, %s2741_s5  ;;  %s3337_s5 = scalar_lea.vmem %s3285_s11, %s2898_s26 }
 0x425   : > { %1529 = vrot.lane.b32.xlu1 %v3054_v23, %s2745_s23  ;;  %s3338_s23 = scalar_lea.vmem %s3287_s13, %s2898_s26 }
 0x42d   : > { %1606 = vrot.lane.b32.xlu1 %v3047_v21, %s2747_s2 }
 0x435   : > { %1705 = vrot.lane.b32.xlu1 %v3054_v23, %s2748_s28 }
 0x43d   : > { %1677 = vrot.lane.b32.xlu1 %v3047_v21, %s2749_s1 }
 0x445   : > { %1703 = vrot.lane.b32.xlu1 %v3054_v23, %s2749_s1  ;;  %s3340_s1 = sld [smem:[#allocation8_spill]] }
 0x44b   : > { %p2510_p6 = scmp.ne.s32.totalorder %s3340_s1, 1 }
 0x45a   : > { %v1366_v57 = vpop.xlane.xlu2 %1365 }
 0x45b   : > { %v1370_v58 = vsub.f32 %v1362_v45, %v1366_v57 }
 0x45d   : > { %v1372_v59 = vmul.f32 1.442695, %v1370_v58 }
 0x45f   : > { %2630 = vpow2.f32 %v1372_v59 }
 0x462   : > { %v1504_v54 = vpop.permute.xlu2 %1503 }
 0x465   : > { %v2631_v60 = vpop.eup %2630 }
 0x466   : > { %v1376_v62 = vsel %vm1163_vm7, %v2631_v60, 0.0 }
 0x467   : > { %1377 = vadd.xlane.f32.xlu0 %v1376_v62 }
 0x46f   : > { %1215 = vmax.xlane.f32.xlu0 %v1214_v1  ;;  %v1213_v2 = vpop.xlane.xlu1 %1212 }
 0x470   : > { %v1217_v3 = vsub.f32 %v1209_v52, %v1213_v2 }
 0x472   : > { %v1219_v5 = vmul.f32 1.442695, %v1217_v3 }
 0x474   : > { %2632 = vpow2.f32 %v1219_v5 }
 0x477   : > { %1368 = vmax.xlane.f32.xlu0 %v1367_v6 }
 0x47a   : > { %v3093_v7 = vpop.eup %2632 }
 0x47b   : > { %v1223_v8 = vsel %vm1163_vm7, %v3093_v7, 0.0 }
 0x47f   : > { %1224 = vadd.xlane.f32.xlu0 %v1223_v8 }
 0x487   : > { %v1262_v11 = vpop.permute.xlu1 %1261 }
 0x488   : > { %v1268_v12 = vsel %vm1266_vm8, %v1262_v11, 0 }
 0x489   : > { %1277 = vmatpush.bf16.msra.mxu3 %v1268_v12 }
 0x48f   : > { %v3100_v13 = vpop.permute.xlu1 %1435 }
 0x497   : > { %v3102_v14 = vpop.permute.xlu1 %1529 }
 0x49f   : > { %v1607_v15 = vpop.permute.xlu1 %1606 }
 0x4a0   : > { %v1612_v17 = vsel %vm1266_vm8, %v1607_v15, 0 }
 0x4a1   : > { %1621 = vmatpush.bf16.msrb.mxu0 %v1612_v17 }
 0x4da   : > { %v1378_v19 = vpop.xlane.xlu0 %1377 }
 0x4db   : > { %2634 = vrcp.f32 %v1378_v19  ;;  %v1393_v29 = vand.u32 2147483648, %v1378_v19  ;;  %v1391_v32 = vand.u32 2147483647, %v1378_v19  ;;  %vm1387_vm11 = vweird.f32 %v1378_v19 }
 0x4dd   : > { %v1394_v34 = vor.u32 1.1754944e-38, %v1393_v29  ;;  %vm1392_vm15 = vcmp.eq.f32.partialorder %v1391_v32, 8.507059e+37 }
 0x4e1   : > { %v2635_v22 = vpop.eup %2634 }
 0x4e2   : > { %v1383_v24 = vmul.f32 %v2635_v22, %v1378_v19  ;;  %v1216_v25 = vpop.xlane.xlu0 %1215  ;;  %vm1388_vm10 = vweird.f32 %v2635_v22 }
 0x4e3   : > { %v1218_v27 = vsub.f32 %v1210_v63, %v1216_v25  ;;  %vm1389_vm12 = vmor %vm1387_vm11, %vm1388_vm10 }
 0x4e4   : > { %v1384_v28 = vsub.f32 1.0, %v1383_v24  ;;  %v1441_v24 = vsel %vm1266_vm8, %v3100_v13, 0 }
 0x4e5   : > { %v1221_v30 = vmul.f32 1.442695, %v1218_v27 }
 0x4e6   : > { %v1385_v31 = vmul.f32 %v2635_v22, %v1384_v28 }
 0x4e7   : > { %2636 = vpow2.f32 %v1221_v30 }
 0x4e8   : > { %v1386_v33 = vadd.f32 %v2635_v22, %v1385_v31 }
 0x4ea   : > { %v1390_v35 = vsel %vm1389_vm12, %v2635_v22, %v1386_v33  ;;  %v1369_v36 = vpop.xlane.xlu0 %1368 }
 0x4eb   : > { %v1395_v37 = vsel %vm1392_vm15, %v1394_v34, %v1390_v35  ;;  %v1371_v38 = vsub.f32 %v1363_v4, %v1369_v36 }
 0x4ec   : > { %v1396_v39 = vmul.f32 %v2631_v60, %v1395_v37 }
 0x4ed   : > { %v2637_v40 = vpop.eup %2636  ;;  %v1374_v41 = vmul.f32 1.442695, %v1371_v38 }
 0x4ee   : > { %v1226_v42 = vsel %vm1163_vm7, %v2637_v40, 0.0  ;;  %v1412_v44 = vpack.c.bf16 %v1396_v39, %v1396_v39 }
 0x4ef   : > { %2638 = vpow2.f32 %v1374_v41  ;;  %1227 = vadd.xlane.f32.xlu2 %v1226_v42 }
 0x4f0   : > { %2453 = vmatmul.msk.bf16.vlgmr.msra.gmra.mxu2 %vm1163_vm7, %v1412_v44  ;;  %v1305_v44 = vld [vmem:[%s2927_s7] sm:$0xf] }
 0x4f2   : > { %v1225_v45 = vpop.xlane.xlu0 %1224 }
 0x4f3   : > { %2640 = vrcp.f32 %v1225_v45  ;;  %v1240_v51 = vand.u32 2147483648, %v1225_v45  ;;  %v1238_v53 = vand.u32 2147483647, %v1225_v45  ;;  %vm1234_vm1 = vweird.f32 %v1225_v45 }
 0x4f5   : > { %v3107_v46 = vpop.eup %2638  ;;  %v1241_v56 = vor.u32 1.1754944e-38, %v1240_v51  ;;  %vm1239_vm3 = vcmp.eq.f32.partialorder %v1238_v53, 8.507059e+37 }
 0x4f6   : > { %v1379_v47 = vsel %vm1163_vm7, %v3107_v46, 0.0 }
 0x4f7   : > { %1380 = vadd.xlane.f32.xlu0 %v1379_v47 }
 0x4f9   : > { %v2641_v48 = vpop.eup %2640 }
 0x4fa   : > { %v1230_v49 = vmul.f32 %v2641_v48, %v1225_v45  ;;  %vm1235_vm0 = vweird.f32 %v2641_v48  ;;  %v1482_v45 = vsel %vm1266_vm8, %v1305_v44, 0 }
 0x4fb   : > { %vm1236_vm2 = vmor %vm1234_vm1, %vm1235_vm0  ;;  %1491 = vmatpush.bf16.msrb.mxu1 %v1482_v45 }
 0x4fc   : > { %v1231_v50 = vsub.f32 1.0, %v1230_v49 }
 0x4fe   : > { %v1232_v52 = vmul.f32 %v2641_v48, %v1231_v50 }
 0x500   : > { %2457 = vmatmul.msk.bf16.vlgmr.msrb.gmra.mxu2 %vm1163_vm7, %v1504_v54  ;;  %v1233_v55 = vadd.f32 %v2641_v48, %v1232_v52 }
 0x502   : > { %v1237_v57 = vsel %vm1236_vm2, %v2641_v48, %v1233_v55  ;;  %v1706_v55 = vpop.permute.xlu1 %1705 }
 0x503   : > { %v1242_v58 = vsel %vm1239_vm3, %v1241_v56, %v1237_v57 }
 0x504   : > { %v1243_v59 = vmul.f32 %v3093_v7, %v1242_v58  ;;  %v1711_v58 = vsel %vm1163_vm7, %v1706_v55, 0 }
 0x506   : > { %v1259_v60 = vpack.c.bf16 %v1243_v59, %v1243_v59 }
 0x508   : > { %2449 = vmatmul.msk.bf16.vlgmr.msra.gmra.mxu3 %vm1163_vm7, %v1259_v60 }
 0x50b   : > { %1283 = vrot.lane.b32.xlu0 %v3045_v20, %s2746_s20 }
 0x513   : > { %1531 = vrot.lane.b32.xlu0 %v3054_v23, %s2743_s30 }
 0x562   : > { %v1228_v61 = vpop.xlane.xlu2 %1227 }
 0x563   : > { %2642 = vrcp.f32 %v1228_v61  ;;  %v1255_v5 = vand.u32 2147483648, %v1228_v61  ;;  %vm1249_vm5 = vweird.f32 %v1228_v61  ;;  %v1253_v7 = vand.u32 2147483647, %v1228_v61 }
 0x565   : > { %v1256_v9 = vor.u32 1.1754944e-38, %v1255_v5  ;;  %vm1254_vm9 = vcmp.eq.f32.partialorder %v1253_v7, 8.507059e+37 }
 0x569   : > { %v2643_v62 = vpop.eup %2642 }
 0x56a   : > { %v1245_v63 = vmul.f32 %v2643_v62, %v1228_v61  ;;  %v1381_v0 = vpop.xlane.xlu0 %1380  ;;  %vm1250_vm4 = vweird.f32 %v2643_v62 }
 0x56b   : > { %2644 = vrcp.f32 %v1381_v0  ;;  %vm1251_vm6 = vmor %vm1249_vm5, %vm1250_vm4  ;;  %v1408_v28 = vand.u32 2147483648, %v1381_v0  ;;  %vm1402_vm11 = vweird.f32 %v1381_v0  ;;  %v1406_v30 = vand.u32 2147483647, %v1381_v0 }
 0x56c   : > { %v1246_v1 = vsub.f32 1.0, %v1245_v63 }
 0x56d   : > { %v1409_v35 = vor.u32 1.1754944e-38, %v1408_v28  ;;  %vm1407_vm15 = vcmp.eq.f32.partialorder %v1406_v30, 8.507059e+37 }
 0x56e   : > { %v1247_v2 = vmul.f32 %v2643_v62, %v1246_v1 }
 0x570   : > { %v1248_v3 = vadd.f32 %v2643_v62, %v1247_v2 }
 0x571   : > { %v2645_v4 = vpop.eup %2644 }
 0x572   : > { %v1398_v20 = vmul.f32 %v2645_v4, %v1381_v0  ;;  %v1252_v8 = vsel %vm1251_vm6, %v2643_v62, %v1248_v3  ;;  %vm1403_vm10 = vweird.f32 %v2645_v4 }
 0x573   : > { %v3118_v6 = vpop.f32.mrf.mxu2  ;;  %v1257_v10 = vsel %vm1254_vm9, %v1256_v9, %v1252_v8  ;;  %vm1404_vm12 = vmor %vm1402_vm11, %vm1403_vm10 }
 0x574   : > { %v1399_v11 = vsub.f32 1.0, %v1398_v20  ;;  %v1258_v15 = vmul.f32 %v2637_v40, %v1257_v10 }
 0x576   : > { %v1400_v19 = vmul.f32 %v2645_v4, %v1399_v11  ;;  %v1260_v25 = vpack.c.bf16 %v1258_v15, %v1258_v15  ;;  %v1678_v11 = vpop.permute.xlu1 %1677 }
 0x578   : > { %v1401_v27 = vadd.f32 %v2645_v4, %v1400_v19 }
 0x57a   : > { %v1405_v33 = vsel %vm1404_vm12, %v2645_v4, %v1401_v27 }
 0x57b   : > { %v1433_v12 = vpop.f32.mrf.mxu2  ;;  %v1410_v37 = vsel %vm1407_vm15, %v1409_v35, %v1405_v33 }
 0x57c   : > { %v1411_v40 = vmul.f32 %v3107_v46, %v1410_v37 }
 0x57d   : > { %v1284_v17 = vpop.permute.xlu0 %1283 }
 0x57e   : > { %v1289_v22 = vsel %vm1266_vm8, %v1284_v17, 0  ;;  %v1413_v41 = vpack.c.bf16 %v1411_v40, %v1411_v40  ;;  %v1704_v27 = vpop.permute.xlu1 %1703 }
 0x57f   : > { %1298 = vmatpush.bf16.msrb.mxu3 %v1289_v22 }
 0x582   : > { %2450 = vmatmul.msk.bf16.vlgmr.msrb.gmra.mxu3 %vm1163_vm7, %v1260_v25 }
 0x583   : > { %1450 = vmatpush.bf16.msra.mxu3 %v1441_v24  ;;  %v1522_v29 = vpop.f32.mrf.mxu2 }
 0x584   : > { %v1552_v31 = vmul.f32 0.35355338, %v1522_v29 }
 0x585   : > { %v1532_v32 = vpop.permute.xlu0 %1531 }
 0x586   : > { %v1537_v34 = vsel %vm1163_vm7, %v1532_v32, 0  ;;  %v1554_v13 = vadd.f32 %v1552_v31, %v3070_v43 }
 0x587   : > { %1546 = vmatpush.bf16.xpose.msrb.mxu3 %v1537_v34 }
 0x588   : > { %v1556_v36 = vsel %vm1163_vm7, %v1554_v13, -inf }
 0x589   : > { %1557 = vmax.xlane.f32.xlu0 %v1556_v36 }
 0x58b   : > { %v1279_v38 = vpop.f32.mrf.mxu3  ;;  %v1524_v39 = vpop.f32.mrf.mxu2 }
 0x592   : > { %2454 = vmatmul.msk.bf16.vlgmr.msra.gmra.mxu3 %vm1163_vm7, %v1413_v41 }
 0x593   : > { %v1281_v42 = vpop.f32.mrf.mxu3 }
 0x59d   : > { %1627 = vrot.lane.b32.xlu0 %v3054_v23, %s2747_s2  ;;  %s3339_s2 = scalar_lea.vmem %s3289_s15, %s2898_s26 }
 0x5a2   : > { %2458 = vmatmul.msk.bf16.vlgmr.msrb.gmra.mxu3 %vm1163_vm7, %v3102_v14 }
 0x5fc   : > { %v1558_v47 = vpop.xlane.xlu0 %1557 }
 0x5fd   : > { %v1562_v48 = vsub.f32 %v1554_v13, %v1558_v47 }
 0x5ff   : > { %v1564_v49 = vmul.f32 1.442695, %v1562_v48 }
 0x601   : > { %2646 = vpow2.f32 %v1564_v49 }
 0x605   : > { %v1300_v50 = vpop.f32.mrf.mxu3 }
 0x606   : > { %v1304_v46 = vpack.c.bf16 %v1300_v50, %v1279_v38 }
 0x607   : > { %v2647_v51 = vpop.eup %2646 }
 0x608   : > { %2456 = vmatmul.msk.bf16.vlgmr.msrb.gmra.mxu1 %vm1163_vm7, %v1304_v46  ;;  %v1568_v52 = vsel %vm1163_vm7, %v2647_v51, 0.0 }
 0x609   : > { %1569 = vadd.xlane.f32.xlu2 %v1568_v52 }
 0x60d   : > { %v1302_v53 = vpop.f32.mrf.mxu3 }
 0x60f   : > { %v1628_v54 = vpop.permute.xlu0 %1627 }
 0x610   : > { %v1633_v14 = vsel %vm1266_vm8, %v1628_v54, 0 }
 0x611   : > { %1642 = vmatpush.bf16.msra.mxu1 %v1633_v14 }
 0x615   : > { %v1452_v56 = vpop.f32.mrf.mxu3 }
 0x616   : > { %v1456_v57 = vpack.c.bf16 %v1452_v56, %v3118_v6 }
 0x618   : > { %2455 = vmatmul.msk.bf16.vlgmr.msra.gmra.mxu0 %vm1163_vm7, %v1456_v57 }
 0x619   : > { %1720 = vmatpush.bf16.xpose.msra.mxu0 %v1711_v58 }
 0x61d   : > { %v1454_v59 = vpop.f32.mrf.mxu3 }
 0x621   : > { %1679 = vrot.lane.b32.xlu2 %v3047_v21, %s2748_s28 }
 0x625   : > { %v1548_v60 = vpop.f32.mrf.mxu3 }
 0x626   : > { %v1553_v62 = vmul.f32 0.35355338, %v1548_v60 }
 0x628   : > { %v1555_v63 = vadd.f32 %v1553_v62, %v3070_v43 }
 0x62a   : > { %v1559_v0 = vsel %vm1163_vm7, %v1555_v63, -inf }
 0x62d   : > { %v1550_v61 = vpop.f32.mrf.mxu3 }
 0x64a   : > { %1560 = vmax.xlane.f32.xlu2 %v1559_v0 }
 0x67c   : > { %v1570_v1 = vpop.xlane.xlu2 %1569 }
 0x67d   : > { %2648 = vrcp.f32 %v1570_v1  ;;  %v1585_v7 = vand.u32 2147483648, %v1570_v1  ;;  %v1583_v8 = vand.u32 2147483647, %v1570_v1  ;;  %vm1579_vm1 = vweird.f32 %v1570_v1 }
 0x67f   : > { %v1586_v10 = vor.u32 1.1754944e-38, %v1585_v7  ;;  %vm1584_vm3 = vcmp.eq.f32.partialorder %v1583_v8, 8.507059e+37 }
 0x683   : > { %v2649_v2 = vpop.eup %2648 }
 0x684   : > { %v1575_v3 = vmul.f32 %v2649_v2, %v1570_v1  ;;  %v1680_v4 = vpop.permute.xlu2 %1679  ;;  %vm1580_vm0 = vweird.f32 %v2649_v2 }
 0x685   : > { %v1685_v5 = vsel %vm1163_vm7, %v1680_v4, 0  ;;  %vm1581_vm2 = vmor %vm1579_vm1, %vm1580_vm0  ;;  %v1493_v22 = vpop.f32.mrf.mxu1 }
 0x686   : > { %v1576_v6 = vsub.f32 1.0, %v1575_v3  ;;  %1694 = vmatpush.bf16.xpose.msra.mxu3 %v1685_v5  ;;  %v1649_v3 = vld [vmem:[%s2927_s7 + $0x8] sm:$0xf] }
 0x687   : > { %v1654_v4 = vsel %vm1266_vm8, %v1649_v3, 0 }
 0x688   : > { %v1577_v20 = vmul.f32 %v2649_v2, %v1576_v6  ;;  %1663 = vmatpush.bf16.msra.mxu2 %v1654_v4 }
 0x68a   : > { %v1578_v9 = vadd.f32 %v2649_v2, %v1577_v20 }
 0x68c   : > { %v1582_v12 = vsel %vm1581_vm2, %v2649_v2, %v1578_v9 }
 0x68d   : > { %v1587_v15 = vsel %vm1584_vm3, %v1586_v10, %v1582_v12  ;;  %2462 = vmatmul.msk.bf16.vlgmr.msra.gmra.mxu3 %vm1163_vm7, %v1678_v11  ;;  %v3165_v5 = vpop.f32.mrf.mxu1 }
 0x68e   : > { %v1588_v17 = vmul.f32 %v2647_v51, %v1587_v15 }
 0x690   : > { %v1604_v19 = vpack.c.bf16 %v1588_v17, %v1588_v17 }
 0x692   : > { %2459 = vmatmul.msk.bf16.vlgmr.msrb.gmra.mxu0 %vm1163_vm7, %v1604_v19 }
 0x695   : > { %v1473_v24 = vpop.f32.mrf.mxu0 }
 0x696   : > { %v3148_v25 = vadd.f32 %v1493_v22, %v1473_v24 }
 0x69d   : > { %v3152_v33 = vpop.f32.mrf.mxu0 }
 0x6a2   : > { %2463 = vmatmul.msk.bf16.vlgmr.msra.gmra.mxu0 %vm1163_vm7, %v1704_v27 }
 0x6bd   : > { %v1561_v28 = vpop.xlane.xlu2 %1560 }
 0x6be   : > { %v1563_v29 = vsub.f32 %v1555_v63, %v1561_v28 }
 0x6c0   : > { %v1566_v30 = vmul.f32 1.442695, %v1563_v29 }
 0x6c2   : > { %2650 = vpow2.f32 %v1566_v30 }
 0x6c8   : > { %v2651_v31 = vpop.eup %2650 }
 0x6c9   : > { %v1571_v32 = vsel %vm1163_vm7, %v2651_v31, 0.0 }
 0x6ca   : > { %1572 = vadd.xlane.f32.xlu1 %v1571_v32 }
 0x70f   : > { %v1623_v34 = vpop.f32.mrf.mxu0 }
 0x710   : > { %v1696_v13 = vpop.f32.mrf.mxu3 }
 0x711   : > { %v1726_v35 = vmul.f32 0.35355338, %v1696_v13 }
 0x713   : > { %v1728_v36 = vadd.f32 %v1726_v35, %v3070_v43 }
 0x715   : > { %v1730_v37 = vsel %vm1163_vm7, %v1728_v36, -inf }
 0x716   : > { %1731 = vmax.xlane.f32.xlu2 %v1730_v37 }
 0x717   : > { %v1625_v38 = vpop.f32.mrf.mxu0 }
 0x718   : > { %v1698_v39 = vpop.f32.mrf.mxu3 }
 0x71f   : > { %v1722_v40 = vpop.f32.mrf.mxu0 }
 0x720   : > { %v1727_v41 = vmul.f32 0.35355338, %v1722_v40 }
 0x722   : > { %v1729_v42 = vadd.f32 %v1727_v41, %v3070_v43 }
 0x724   : > { %v1733_v44 = vsel %vm1163_vm7, %v1729_v42, -inf }
 0x725   : > { %1734 = vmax.xlane.f32.xlu0 %v1733_v44 }
 0x727   : > { %v1724_v45 = vpop.f32.mrf.mxu0 }
 0x73d   : > { %v1573_v47 = vpop.xlane.xlu1 %1572 }
 0x73e   : > { %2652 = vrcp.f32 %v1573_v47  ;;  %v1600_v46 = vand.u32 2147483648, %v1573_v47  ;;  %v1598_v52 = vand.u32 2147483647, %v1573_v47  ;;  %vm1594_vm5 = vweird.f32 %v1573_v47 }
 0x740   : > { %v1601_v54 = vor.u32 1.1754944e-38, %v1600_v46  ;;  %vm1599_vm9 = vcmp.eq.f32.partialorder %v1598_v52, 8.507059e+37 }
 0x744   : > { %v2653_v48 = vpop.eup %2652 }
 0x745   : > { %v1590_v49 = vmul.f32 %v2653_v48, %v1573_v47  ;;  %vm1595_vm4 = vweird.f32 %v2653_v48 }
 0x746   : > { %vm1596_vm6 = vmor %vm1594_vm5, %vm1595_vm4 }
 0x747   : > { %v1591_v50 = vsub.f32 1.0, %v1590_v49  ;;  %v1823_v49 = vld [vmem:[%s2927_s7 + $0xc] sm:$0xf]  ;;  %s3342_s7 = sld [smem:[#allocation20_spill]] (!%p2510_p6) }
 0x749   : > { %v1592_v51 = vmul.f32 %v2653_v48, %v1591_v50  ;;  %v1828_v50 = vsel %vm1266_vm8, %v1823_v49, 0  ;;  %v2543_v49 = vld [vmem:[%s2954_s22 + $0x30] sm:$0xff] }
 0x74a   : > { %1837 = vmatpush.bf16.msrb.mxu3 %v1828_v50  ;;  %v2542_v50 = vld [vmem:[%s2954_s22 + $0x28] sm:$0xff] }
 0x74b   : > { %v1593_v53 = vadd.f32 %v2653_v48, %v1592_v51 }
 0x74d   : > { %v1597_v14 = vsel %vm1596_vm6, %v2653_v48, %v1593_v53 }
 0x74e   : > { %v1602_v43 = vsel %vm1599_vm9, %v1601_v54, %v1597_v14 }
 0x74f   : > { %v1603_v55 = vmul.f32 %v2651_v31, %v1602_v43  ;;  %v2619_v43 = vld [vmem:[%s3337_s5] ss:$0 sm:$0xff] }
 0x751   : > { %v1605_v56 = vpack.c.bf16 %v1603_v55, %v1603_v55 }
 0x753   : > { %2460 = vmatmul.msk.bf16.vlgmr.msra.gmra.mxu1 %vm1163_vm7, %v1605_v56 }
 0x789   : > { %v1732_v57 = vpop.xlane.xlu2 %1731 }
 0x78a   : > { %v1736_v58 = vsub.f32 %v1728_v36, %v1732_v57  ;;  %v1496_v57 = vadd.f32 %v3165_v5, %v3152_v33 }
 0x78c   : > { %v1738_v59 = vmul.f32 1.442695, %v1736_v58 }
 0x78e   : > { %2654 = vpow2.f32 %v1738_v59 }
 0x794   : > { %v2655_v60 = vpop.eup %2654 }
 0x795   : > { %v1742_v61 = vsel %vm1163_vm7, %v2655_v60, 0.0 }
 0x796   : > { %1743 = vadd.xlane.f32.xlu2 %v1742_v61 }
 0x798   : > { %v1735_v62 = vpop.xlane.xlu0 %1734 }
 0x799   : > { %v1737_v63 = vsub.f32 %v1729_v42, %v1735_v62 }
 0x79b   : > { %v1740_v0 = vmul.f32 1.442695, %v1737_v63 }
 0x79d   : > { %2656 = vpow2.f32 %v1740_v0 }
 0x7a3   : > { %v2657_v1 = vpop.eup %2656 }
 0x7a4   : > { %v1745_v2 = vsel %vm1163_vm7, %v2657_v1, 0.0 }
 0x7a5   : > { %1746 = vadd.xlane.f32.xlu1 %v1745_v2 }
 0x7ae   : > { %1780 = vrot.lane.b32.xlu2 %v3047_v21, %s2750_s3 }
 0x7be   : > { %1801 = vrot.lane.b32.xlu1 %v3054_v23, %s2750_s3  ;;  %s3341_s3 = sld [smem:[#allocation22_spill]] (!%p2510_p6) }
 0x7d0   : > { %v1644_v6 = vpop.f32.mrf.mxu1 }
 0x7d1   : > { %v1648_v7 = vpack.c.bf16 %v1644_v6, %v1623_v34 }
 0x7d3   : > { %2461 = vmatmul.msk.bf16.vlgmr.msra.gmra.mxu2 %vm1163_vm7, %v1648_v7 }
 0x7d8   : > { %v1646_v20 = vpop.f32.mrf.mxu1 }
 0x809   : > { %v1744_v8 = vpop.xlane.xlu2 %1743 }
 0x80a   : > { %2658 = vrcp.f32 %v1744_v8  ;;  %v1759_v15 = vand.u32 2147483648, %v1744_v8  ;;  %v1757_v23 = vand.u32 2147483647, %v1744_v8  ;;  %vm1753_vm11 = vweird.f32 %v1744_v8 }
 0x80c   : > { %v1760_v22 = vor.u32 1.1754944e-38, %v1759_v15  ;;  %vm1758_vm15 = vcmp.eq.f32.partialorder %v1757_v23, 8.507059e+37 }
 0x810   : > { %v2659_v9 = vpop.eup %2658 }
 0x811   : > { %v1749_v10 = vmul.f32 %v2659_v9, %v1744_v8  ;;  %v1781_v11 = vpop.permute.xlu2 %1780  ;;  %vm1754_vm10 = vweird.f32 %v2659_v9  ;;  %v2536_v8 = vld [vmem:[%s2944_s19 + $0x8] sm:$0xff] }
 0x812   : > { %v1786_v21 = vsel %vm1266_vm8, %v1781_v11, 0  ;;  %vm1755_vm12 = vmor %vm1753_vm11, %vm1754_vm10  ;;  %1940 = vmatpush.bf16.msrb.mxu0 %v2536_v8 }
 0x813   : > { %v1750_v12 = vsub.f32 1.0, %v1749_v10  ;;  %1795 = vmatpush.bf16.msrb.mxu1 %v1786_v21  ;;  %v2535_v21 = vld [vmem:[%s2944_s19] sm:$0xff] }
 0x815   : > { %v1751_v17 = vmul.f32 %v2659_v9, %v1750_v12 }
 0x816   : > { %1941 = vmatpush.bf16.msrb.mxu0 %v2535_v21 }
 0x817   : > { %v1752_v19 = vadd.f32 %v2659_v9, %v1751_v17 }
 0x818   : > { %v1747_v24 = vpop.xlane.xlu1 %1746 }
 0x819   : > { %v1756_v27 = vsel %vm1755_vm12, %v2659_v9, %v1752_v19  ;;  %2660 = vrcp.f32 %v1747_v24  ;;  %v1774_v36 = vand.u32 2147483648, %v1747_v24  ;;  %vm1768_vm1 = vweird.f32 %v1747_v24 }
 0x81a   : > { %v1761_v28 = vsel %vm1758_vm15, %v1760_v22, %v1756_v27  ;;  %v1772_v37 = vand.u32 2147483647, %v1747_v24 }
 0x81b   : > { %v1762_v29 = vmul.f32 %v2655_v60, %v1761_v28  ;;  %v1775_v39 = vor.u32 1.1754944e-38, %v1774_v36 }
 0x81c   : > { %vm1773_vm3 = vcmp.eq.f32.partialorder %v1772_v37, 8.507059e+37 }
 0x81d   : > { %v1778_v30 = vpack.c.bf16 %v1762_v29, %v1762_v29 }
 0x81f   : > { %v2661_v31 = vpop.eup %2660  ;;  %2464 = vmatmul.msk.bf16.vlgmr.msrb.gmra.mxu1 %vm1163_vm7, %v1778_v30 }
 0x820   : > { %v1764_v32 = vmul.f32 %v2661_v31, %v1747_v24  ;;  %vm1769_vm0 = vweird.f32 %v2661_v31 }
 0x821   : > { %vm1770_vm2 = vmor %vm1768_vm1, %vm1769_vm0 }
 0x822   : > { %v1765_v34 = vsub.f32 1.0, %v1764_v32 }
 0x824   : > { %v1766_v13 = vmul.f32 %v2661_v31, %v1765_v34 }
 0x826   : > { %v1767_v35 = vadd.f32 %v2661_v31, %v1766_v13 }
 0x828   : > { %v1771_v38 = vsel %vm1770_vm2, %v2661_v31, %v1767_v35  ;;  %v2620_v35 = vld [vmem:[%s906_s0] ss:$0 sm:$0xff] }
 0x829   : > { %v1776_v40 = vsel %vm1773_vm3, %v1775_v39, %v1771_v38  ;;  %v2621_v39 = vld [vmem:[%s3338_s23] ss:$0 sm:$0xff]  ;;  %s3343_s23 = sld [smem:[#allocation21_spill]] (!%p2510_p6) }
 0x82a   : > { %v1777_v41 = vmul.f32 %v2657_v1, %v1776_v40 }
 0x82c   : > { %v1779_v45 = vpack.c.bf16 %v1777_v41, %v1777_v41 }
 0x830   : > { %v1802_v42 = vpop.permute.xlu1 %1801 }
 0x831   : > { %v1807_v44 = vsel %vm1266_vm8, %v1802_v42, 0 }
 0x832   : > { %1816 = vmatpush.bf16.msrb.mxu2 %v1807_v44 }
 0x835   : > { %2465 = vmatmul.msk.bf16.vlgmr.msrb.gmra.mxu2 %vm1163_vm7, %v1779_v45 }
 0x856   : > { %v1665_v47 = vpop.f32.mrf.mxu2 }
 0x857   : > { %v1670_v48 = vadd.f32 %v1665_v47, %v3148_v25 }
 0x85e   : > { %v1667_v52 = vpop.f32.mrf.mxu2 }
 0x85f   : > { %v1671_v59 = vadd.f32 %v1667_v52, %v1496_v57  ;;  %v2540_v52 = vld [vmem:[%s2954_s22 + $0x18] sm:$0xff] }
 0x89c   : > { %v1797_v46 = vpop.f32.mrf.mxu1 }
 0x8a4   : > { %v1799_v51 = vpop.f32.mrf.mxu1 }
 0x8a5   : > { %v2622_v51 = vld [vmem:[%s3339_s2] ss:$0 sm:$0xff]  ;;  %s3344_s2 = sld [smem:[#allocation23_spill]] (!%p2510_p6) }
 0x8b8   : > { %v1818_v53 = vpop.f32.mrf.mxu2 }
 0x8b9   : > { %v1822_v54 = vpack.c.bf16 %v1818_v53, %v1797_v46  ;;  %v2541_v46 = vld [vmem:[%s2954_s22 + $0x20] sm:$0xff] }
 0x8bb   : > { %2466 = vmatmul.msk.bf16.vlgmr.msrb.gmra.mxu3 %vm1163_vm7, %v1822_v54 }
 0x8c0   : > { %v1820_v14 = vpop.f32.mrf.mxu2 }
 0x8c1   : > { %v2539_v14 = vld [vmem:[%s2954_s22 + $0x10] sm:$0xff] }
 0x93e   : > { %v1839_v55 = vpop.f32.mrf.mxu3 }
 0x93f   : > { %v1844_v56 = vadd.f32 %v1839_v55, %v1670_v48  ;;  %v2544_v48 = vld [vmem:[%s2954_s22 + $0x38] sm:$0xff] }
 0x940   : > { %2059 = vmatpush.bf16.msra.mxu1 %v2544_v48 }
 0x941   : > { %v1850_v25 = vadd.f32 %v2619_v43, %v1844_v56  ;;  %v2538_v56 = vld [vmem:[%s2954_s22 + $0x8] sm:$0xff] }
 0x943   : > { %v3184_v58 = vadd.f32 %v1850_v25, %v3006_v16 }
 0x944   : > { %2060 = vmatpush.bf16.msra.mxu1 %v2543_v49 }
 0x945   : > { %v1856_v60 = vsel %vm1051_vm14, %v3184_v58, 0.0 }
 0x946   : > { %1857 = vadd.xlane.f32.xlu0 %v1856_v60  ;;  %v1841_v61 = vpop.f32.mrf.mxu3 }
 0x947   : > { %v1845_v62 = vadd.f32 %v1841_v61, %v1671_v59  ;;  %v2537_v59 = vld [vmem:[%s2954_s22] sm:$0xff]  ;;  %s2197_s22 = sld [smem:[#allocation4]] (!%p2510_p6) }
 0x948   : > { %2061 = vmatpush.bf16.msra.mxu1 %v2542_v50 }
 0x949   : > { %v1851_v63 = vadd.f32 %v2619_v43, %v1845_v62 }
 0x94b   : > { %v3189_v0 = vadd.f32 %v1851_v63, %v3010_v18 }
 0x94c   : > { %2062 = vmatpush.bf16.msra.mxu1 %v2541_v46 }
 0x94d   : > { %v1859_v1 = vsel %vm1051_vm14, %v3189_v0, 0.0 }
 0x94e   : > { %1860 = vadd.xlane.f32.xlu1 %v1859_v1 }
 0x950   : > { %2063 = vmatpush.bf16.msra.mxu1 %v2540_v52 }
 0x954   : > { %2064 = vmatpush.bf16.msra.mxu1 %v2539_v14 }
 0x958   : > { %2065 = vmatpush.bf16.msra.mxu1 %v2538_v56 }
 0x95c   : > { %2066 = vmatpush.bf16.msra.mxu1 %v2537_v59 }
 0x9b9   : > { %v1858_v33 = vpop.xlane.xlu0 %1857 }
 0x9ba   : > { %v1862_v16 = vmul.f32 %v1858_v33, %v3014_v26 }
 0x9bc   : > { %v1864_v2 = vsub.f32 %v3184_v58, %v1862_v16 }
 0x9be   : > { %v1866_v3 = vmul.f32 %v1864_v2, %v1864_v2 }
 0x9c0   : > { %v1868_v4 = vsel %vm1051_vm14, %v1866_v3, 0.0 }
 0x9c1   : > { %1869 = vadd.xlane.f32.xlu0 %v1868_v4  ;;  %v1861_v5 = vpop.xlane.xlu1 %1860 }
 0x9c2   : > { %v1863_v6 = vmul.f32 %v1861_v5, %v3014_v26 }
 0x9c4   : > { %v1865_v18 = vsub.f32 %v3189_v0, %v1863_v6 }
 0x9c6   : > { %v1867_v7 = vmul.f32 %v1865_v18, %v1865_v18 }
 0x9c8   : > { %v1871_v20 = vsel %vm1051_vm14, %v1867_v7, 0.0 }
 0x9c9   : > { %1872 = vadd.xlane.f32.xlu2 %v1871_v20 }
 0xa34   : > { %v1870_v9 = vpop.xlane.xlu0 %1869 }
 0xa35   : > { %v1874_v10 = vmul.f32 %v1870_v9, %v3014_v26 }
 0xa37   : > { %v1876_v11 = vadd.f32 1e-05, %v1874_v10 }
 0xa39   : > { %2662 = vrsqrt.f32 %v1876_v11  ;;  %vm1884_vm8 = vweird.f32 %v1876_v11 }
 0xa3c   : > { %v1873_v12 = vpop.xlane.xlu2 %1872 }
 0xa3d   : > { %v1875_v15 = vmul.f32 %v1873_v12, %v3014_v26 }
 0xa3f   : > { %v2663_v17 = vpop.eup %2662  ;;  %v1877_v23 = vadd.f32 1e-05, %v1875_v15 }
 0xa40   : > { %v1879_v19 = vmul.f32 %v2663_v17, %v1876_v11  ;;  %vm1885_vm7 = vweird.f32 %v2663_v17 }
 0xa41   : > { %2664 = vrsqrt.f32 %v1877_v23  ;;  %vm1886_vm4 = vmor %vm1884_vm8, %vm1885_vm7  ;;  %vm1894_vm6 = vweird.f32 %v1877_v23 }
 0xa42   : > { %v1880_v22 = vmul.f32 %v2663_v17, %v1879_v19 }
 0xa44   : > { %v1881_v24 = vmul.f32 0.5, %v1880_v22 }
 0xa46   : > { %v1882_v27 = vsub.f32 1.5, %v1881_v24 }
 0xa47   : > { %v2665_v28 = vpop.eup %2664 }
 0xa48   : > { %v1883_v29 = vmul.f32 %v2663_v17, %v1882_v27  ;;  %v1889_v30 = vmul.f32 %v2665_v28, %v1877_v23  ;;  %vm1895_vm5 = vweird.f32 %v2665_v28 }
 0xa49   : > { %vm1896_vm9 = vmor %vm1894_vm6, %vm1895_vm5 }
 0xa4a   : > { %v1890_v31 = vmul.f32 %v2665_v28, %v1889_v30  ;;  %v1887_v32 = vsel %vm1886_vm4, %v2663_v17, %v1883_v29  ;;  %v2623_v29 = vld [vmem:[%s925_s21] ss:$0 sm:$0xff] }
 0xa4b   : > { %v1898_v36 = vmul.f32 %v1887_v32, %v1864_v2 }
 0xa4c   : > { %v1891_v34 = vmul.f32 0.5, %v1890_v31 }
 0xa4d   : > { %v1903_v40 = vmul.f32 %v2620_v35, %v1898_v36 }
 0xa4e   : > { %v1892_v13 = vsub.f32 1.5, %v1891_v34 }
 0xa4f   : > { %v1908_v44 = vadd.f32 %v2621_v39, %v1903_v40 }
 0xa50   : > { %v1893_v37 = vmul.f32 %v2665_v28, %v1892_v13 }
 0xa52   : > { %v1897_v38 = vsel %vm1896_vm9, %v2665_v28, %v1893_v37 }
 0xa53   : > { %v1899_v41 = vmul.f32 %v1897_v38, %v1865_v18 }
 0xa55   : > { %v1904_v42 = vmul.f32 %v2620_v35, %v1899_v41 }
 0xa57   : > { %v1909_v45 = vadd.f32 %v2621_v39, %v1904_v42 }
 0xa59   : > { %v1910_v47 = vpack.c.bf16 %v1909_v45, %v1908_v44 }
 0xa5b   : > { %2475 = vmatmul.msk.bf16.vlgmr.msrb.gmra.mxu0 %vm1051_vm14, %v1910_v47 }
 0xad8   : > { %v1943_v53 = vpop.f32.mrf.mxu0 }
 0xad9   : > { %v1944_v54 = vadd.f32 %v2622_v51, %v1943_v53 }
 0xadb   : > { %v2476_v43 = vmul.f32 -1.702, %v1944_v54 }
 0xadd   : > { %v1952_v55 = vmul.f32 1.442695, %v2476_v43 }
 0xadf   : > { %2666 = vpow2.f32 %v1952_v55 }
 0xae0   : > { %v1945_v25 = vpop.f32.mrf.mxu0 }
 0xae1   : > { %v1946_v57 = vadd.f32 %v2622_v51, %v1945_v25 }
 0xae3   : > { %v2477_v60 = vmul.f32 -1.702, %v1946_v57 }
 0xae5   : > { %v2667_v61 = vpop.eup %2666  ;;  %v1954_v62 = vmul.f32 1.442695, %v2477_v60 }
 0xae6   : > { %v1956_v63 = vadd.f32 1.0, %v2667_v61 }
 0xae7   : > { %2668 = vpow2.f32 %v1954_v62 }
 0xae8   : > { %2670 = vrcp.f32 %v1956_v63  ;;  %v1969_v7 = vand.u32 2147483648, %v1956_v63  ;;  %vm1963_vm11 = vweird.f32 %v1956_v63  ;;  %v1967_v20 = vand.u32 2147483647, %v1956_v63 }
 0xaea   : > { %v1970_v12 = vor.u32 1.1754944e-38, %v1969_v7  ;;  %vm1968_vm0 = vcmp.eq.f32.partialorder %v1967_v20, 8.507059e+37 }
 0xaed   : > { %v2669_v1 = vpop.eup %2668 }
 0xaee   : > { %v2671_v33 = vpop.eup %2670  ;;  %v1957_v16 = vadd.f32 1.0, %v2669_v1 }
 0xaef   : > { %v1959_v2 = vmul.f32 %v2671_v33, %v1956_v63  ;;  %vm1964_vm10 = vweird.f32 %v2671_v33 }
 0xaf0   : > { %2672 = vrcp.f32 %v1957_v16  ;;  %vm1965_vm12 = vmor %vm1963_vm11, %vm1964_vm10  ;;  %v1984_v9 = vand.u32 2147483648, %v1957_v16  ;;  %v1982_v21 = vand.u32 2147483647, %v1957_v16  ;;  %vm1978_vm1 = vweird.f32 %v1957_v16 }
 0xaf1   : > { %v1960_v3 = vsub.f32 1.0, %v1959_v2 }
 0xaf2   : > { %v1985_v23 = vor.u32 1.1754944e-38, %v1984_v9  ;;  %vm1983_vm3 = vcmp.eq.f32.partialorder %v1982_v21, 8.507059e+37 }
 0xaf3   : > { %v1961_v4 = vmul.f32 %v2671_v33, %v1960_v3 }
 0xaf5   : > { %v1962_v6 = vadd.f32 %v2671_v33, %v1961_v4 }
 0xaf6   : > { %v2673_v5 = vpop.eup %2672 }
 0xaf7   : > { %v1974_v18 = vmul.f32 %v2673_v5, %v1957_v16  ;;  %v1966_v10 = vsel %vm1965_vm12, %v2671_v33, %v1962_v6  ;;  %vm1979_vm15 = vweird.f32 %v2673_v5 }
 0xaf8   : > { %v1971_v17 = vsel %vm1968_vm0, %v1970_v12, %v1966_v10  ;;  %vm1980_vm2 = vmor %vm1978_vm1, %vm1979_vm15 }
 0xaf9   : > { %v1975_v8 = vsub.f32 1.0, %v1974_v18  ;;  %v1988_v24 = vmul.f32 %v1971_v17, %v1944_v54 }
 0xafb   : > { %v1976_v11 = vmul.f32 %v2673_v5, %v1975_v8 }
 0xafd   : > { %v1977_v15 = vadd.f32 %v2673_v5, %v1976_v11 }
 0xaff   : > { %v1981_v19 = vsel %vm1980_vm2, %v2673_v5, %v1977_v15 }
 0xb00   : > { %v1986_v22 = vsel %vm1983_vm3, %v1985_v23, %v1981_v19 }
 0xb01   : > { %v1989_v27 = vmul.f32 %v1986_v22, %v1946_v57 }
 0xb03   : > { %v1990_v28 = vpack.c.bf16 %v1989_v27, %v1988_v24 }
 0xb05   : > { %2067 = vmatmul.bf16.vlgmr.msra.gmra.mxu1 %v1990_v28 }
 0xb82   : > { %v2068_v30 = vpop.f32.mrf.mxu1 }
 0xb83   : > { %v2069_v31 = vadd.f32 %v2623_v29, %v2068_v30 }
 0xb85   : > { %v2073_v32 = vadd.f32 %v2069_v31, %v3184_v58 }
 0xb87   : > { %2075 = vst.msk [vmem:[#allocation2] sm:$0xff] %vm1051_vm14, %v2073_v32 }
 0xb8a   : > { %v2070_v34 = vpop.f32.mrf.mxu1 }
 0xb8b   : > { %v2071_v13 = vadd.f32 %v2623_v29, %v2070_v34  ;;  %2080 = sbr.rel (%p2510_p6) target bundleno = 3657 (0xe49), region = 120 }
 0xb8d   : > { %v2074_v35 = vadd.f32 %v2071_v13, %v3189_v0 }
 0xb8f   : > { %2076 = vst.msk [vmem:[#allocation2 + $0x8] sm:$0xff] %vm1051_vm14, %v2074_v35 }
 0xb90   : > { %v2081_v36 = vld [vmem:[#allocation2] sm:$0x1]  ;;  %vm2088_vm7 = vcmask 1041409   ;;  %v2546_v46 = vld [vmem:[%s3341_s3 + $0x8] sm:$0xff]  ;;  %vm2181_vm5 = vcmask 123904   ;;  %vm2207_vm10 = vcmask 130048   ;;  %v2224_v31 = vstv %s2197_s22 }
 0xb91   : > { %2173 = vmatpush.bf16.msra.mxu0 %v2546_v46  ;;  %v2545_v51 = vld [vmem:[%s3341_s3] sm:$0xff] }
 0xb92   : > { %v2674_v59 = vld [vmem:[%s3342_s7] ss:$0 sm:$0xff] }
 0xb93   : > { %v2547_v21 = vld [vmem:[%s3344_s2] sm:$0xff] }
 0xb94   : > { %2218 = vmatpush.bf16.msra.mxu1 %v2547_v21 }
 0xb95   : > { %2174 = vmatpush.bf16.msra.mxu0 %v2545_v51 }
 0xb96   : > { %v2082_v37 = vld [vmem:[#allocation2 + $0x8] sm:$0x1] }
 0xb97   : > { %v2087_v38 = vrot.slane %v2082_v37, 7 }
 0xb99   : > { %v2089_v39 = vsel %vm2088_vm7, %v2087_v38, %v2081_v36 }
 0xb9a   : > { %v2091_v40 = vsel %vm1040_vm13, %v2089_v39, 0.0 }
 0xb9b   : > { %2092 = vadd.xlane.f32.xlu0 %v2091_v40 }
 0xc0e   : > { %v2093_v58 = vpop.xlane.xlu0 %2092 }
 0xc0f   : > { %v2094_v41 = vmul.f32 %v2093_v58, %v3014_v26 }
 0xc11   : > { %v2096_v42 = vrot.slane %v2094_v41, 1  ;;  %v2099_v44 = vsub.f32 %v2081_v36, %v2094_v41 }
 0xc13   : > { %v2100_v0 = vsub.f32 %v2082_v37, %v2096_v42  ;;  %v2101_v47 = vmul.f32 %v2099_v44, %v2099_v44 }
 0xc15   : > { %v2102_v45 = vmul.f32 %v2100_v0, %v2100_v0 }
 0xc17   : > { %v2105_v48 = vrot.slane %v2102_v45, 7 }
 0xc19   : > { %v2106_v49 = vsel %vm2088_vm7, %v2105_v48, %v2101_v47 }
 0xc1a   : > { %v2108_v50 = vsel %vm1040_vm13, %v2106_v49, 0.0 }
 0xc1b   : > { %2109 = vadd.xlane.f32.xlu0 %v2108_v50 }
 0xc8e   : > { %v2110_v52 = vpop.xlane.xlu0 %2109 }
 0xc8f   : > { %v2111_v53 = vmul.f32 %v2110_v52, %v3014_v26  ;;  %v2675_v26 = vld [vmem:[%s3343_s23] ss:$0 sm:$0xff] }
 0xc91   : > { %v2112_v54 = vadd.f32 1e-05, %v2111_v53 }
 0xc93   : > { %2676 = vrsqrt.f32 %v2112_v54  ;;  %vm2119_vm8 = vweird.f32 %v2112_v54 }
 0xc99   : > { %v2677_v14 = vpop.eup %2676 }
 0xc9a   : > { %v2114_v43 = vmul.f32 %v2677_v14, %v2112_v54  ;;  %vm2120_vm13 = vweird.f32 %v2677_v14 }
 0xc9b   : > { %vm2121_vm4 = vmor %vm2119_vm8, %vm2120_vm13 }
 0xc9c   : > { %v2115_v55 = vmul.f32 %v2677_v14, %v2114_v43 }
 0xc9e   : > { %v2116_v56 = vmul.f32 0.5, %v2115_v55 }
 0xca0   : > { %v2117_v25 = vsub.f32 1.5, %v2116_v56 }
 0xca2   : > { %v2118_v57 = vmul.f32 %v2677_v14, %v2117_v25 }
 0xca4   : > { %v2122_v60 = vsel %vm2121_vm4, %v2677_v14, %v2118_v57 }
 0xca5   : > { %v2124_v61 = vrot.slane %v2122_v60, 1  ;;  %v2127_v62 = vmul.f32 %v2122_v60, %v2099_v44 }
 0xca7   : > { %v2128_v63 = vmul.f32 %v2124_v61, %v2100_v0  ;;  %v2132_v1 = vmul.f32 %v2674_v59, %v2127_v62 }
 0xca9   : > { %v2133_v33 = vmul.f32 %v2674_v59, %v2128_v63  ;;  %v2137_v16 = vadd.f32 %v2675_v26, %v2132_v1 }
 0xcab   : > { %v2138_v2 = vadd.f32 %v2675_v26, %v2133_v33  ;;  %v2139_v3 = vpack.c.bf16 %v2137_v16, %v2137_v16 }
 0xcad   : > { %v2140_v4 = vpack.c.bf16 %v2138_v2, %v2138_v2  ;;  %v2147_v6 = vunpack.c.l.b16 %v2139_v3 }
 0xcaf   : > { %v2148_v5 = vunpack.c.l.b16 %v2140_v4 }
 0xcb1   : > { %v2149_v18 = vrot.slane %v2148_v5, 7 }
 0xcb3   : > { %v2150_v7 = vsel %vm2088_vm7, %v2149_v18, %v2147_v6 }
 0xcb4   : > { %v2151_v20 = vpack.c.b16 %v2150_v7, %v2150_v7 }
 0xcb6   : > { %2519 = vmatmul.msk.bf16.vlgmr.msra.gmra.mxu0 %vm1051_vm14, %v2151_v20 }
 0xd33   : > { %v2176_v8 = vpop.f32.mrf.mxu0 }
 0xd34   : > { %v2180_v9 = vmul.f32 %v2176_v8, %v2176_v8 }
 0xd36   : > { %v2182_v10 = vsel %vm2181_vm5, %v2180_v9, 0.0 }
 0xd37   : > { %2183 = vadd.xlane.f32.xlu1 %v2182_v10 }
 0xd3b   : > { %v2178_v11 = vpop.f32.mrf.mxu0 }
 0xdaa   : > { %v2184_v12 = vpop.xlane.xlu1 %2183 }
 0xdab   : > { %v2185_v15 = vadd.f32 1e-12, %v2184_v12 }
 0xdad   : > { %2678 = vrsqrt.f32 %v2185_v15  ;;  %vm2192_vm6 = vweird.f32 %v2185_v15 }
 0xdb3   : > { %v2679_v17 = vpop.eup %2678 }
 0xdb4   : > { %v2187_v23 = vmul.f32 %v2679_v17, %v2185_v15  ;;  %vm2193_vm14 = vweird.f32 %v2679_v17 }
 0xdb5   : > { %vm2194_vm9 = vmor %vm2192_vm6, %vm2193_vm14 }
 0xdb6   : > { %v2188_v19 = vmul.f32 %v2679_v17, %v2187_v23 }
 0xdb8   : > { %v2189_v22 = vmul.f32 0.5, %v2188_v19 }
 0xdba   : > { %v2190_v24 = vsub.f32 1.5, %v2189_v22 }
 0xdbc   : > { %v2191_v27 = vmul.f32 %v2679_v17, %v2190_v24 }
 0xdbe   : > { %v2195_v28 = vsel %vm2194_vm9, %v2679_v17, %v2191_v27 }
 0xdbf   : > { %v2196_v29 = vmul.f32 %v2195_v28, %v2176_v8 }
 0xdc1   : > { %v2198_v30 = vpack.c.bf16 %v2196_v29, %v2196_v29 }
 0xdc3   : > { %2524 = vmatmul.msk.bf16.vlgmr.msra.gmra.mxu1 %vm2207_vm10, %v2198_v30 }
 0xe40   : > { %v2220_v32 = vpop.f32.mrf.mxu1 }
 0xe41   : > { %v2225_v34 = vmul.f32 %v2224_v31, %v2220_v32 }
 0xe43   : > { %2226 = vst [vmem:[#allocation5] sm:$0x3] %v2225_v34 }
 0xe48   : > { %v2222_v13 = vpop.f32.mrf.mxu1 }
 0xe49 PF: > { %s3345_s28 = sld [smem:[#allocation10_spill]]  ;;  %s2751_s5 = smov [#allocation5]  }
 0xe4a   : > { %s3347_s24 = sld [smem:[#allocation24_spill]]  ;;  %s2235_s19 = sshll.u32 %s2751_s5, 4  ;;  %s2236_s19 = int_to_ptr.vmem [resolvable:$true] %s2235_s19 }
 0xe4f   : > { %s3346_s1 = sadd.s32 4294967295, %s3345_s28  }
 0xe50   : > { %p2564_p7 = scmp.eq.s32.totalorder %s3346_s1, 1  ;;  %s2237_s4 = sshll.u32 %s3347_s24, 4  ;;  %s2238_s4 = int_to_ptr.hbm [resolvable:$true] %s2237_s4 }
 0xe52   : > { %2561 = dma.vmem_to_hbm [thread:$0]  (%p2564_p7), %s2236_s19, 32, %s2238_s4, [#allocation6]  }
 0xe53   : > { %2721 = dma.done.wait (%p2564_p7), [#allocation6], 32  }
 0xe54   : > { %2723 = vsyncadd (%p2564_p7), [#allocation6], 4294967264 }
 0xe55 PF: > { %s3348_s7 = sld [smem:[#allocation10_spill]] }
 0xe56   : > { %s3349_s24 = sld [smem:[#allocation9_spill]] }
 0xe57   : > { %s3350_s25 = sld [smem:[#allocation11_spill]] }
 0xe5b   : > { %s35_s5 = sadd.s32 1, %s3348_s7  }
 0xe5c   : > { %p32_p8 = scmp.ge.s32.totalorder %s35_s5, 4  }
 0xe5e   :  { %34 = sbr.rel (!%p32_p8) target bundleno = 17 (0x11), region = 187 }
 0xe63   :  { %2251 = vsyncpa [#allocation6], 1 }
 0xe64   :  { %2253 = vsyncpa [#allocation6 + $0x1], 1 }

</bundles_post_ra>
